<compile_context>
chip_gen: v5e
topology: v5e:2x2
jax: 0.10.0
libtpu: 0.0.40
codegen_flags: <defaults>
</compile_context>

<pallas_src>
import jax
import jax.numpy as jnp
import numpy as np
from jax.experimental import pallas as pl
from jax.experimental.pallas import tpu as pltpu

# --- model hyperparameters (small, consistent with the module) ---
B = 2            # batch
N = 8            # sequence length
DIM = 32         # model dim
HEADS = 4
DIM_HEAD = 16
INNER = HEADS * DIM_HEAD            # 64
SCALE = DIM_HEAD ** (-0.5)
LN_EPS = 1e-5
BN = B * N


def attention_kernel(x_ref, wqkv_ref, wo_ref, bias_ref, o_ref):
    """Single invocation, whole batch resident in VMEM.

    x_ref:    (B*N, DIM)
    wqkv_ref: (DIM, 3*INNER)   columns [q | k | v]; LN gamma and softmax scale pre-folded
    wo_ref:   (INNER, DIM)
    bias_ref: (2, 3*INNER)     row 0 = folded QKV bias (beta @ W_qkv_scaled),
                               row 1[:DIM] = output-projection bias
    o_ref:    (B*N, DIM)
    """
    x = x_ref[...]                                            # (BN, DIM) f32

    # --- LayerNorm statistics (affine folded into QKV weights/bias) ---
    mean = jnp.mean(x, axis=-1, keepdims=True)
    xc = x - mean
    var = jnp.mean(xc * xc, axis=-1, keepdims=True)
    xn = xc * jax.lax.rsqrt(var + LN_EPS)                     # (BN, DIM)

    b_qkv = bias_ref[0:1, :]                                  # (1, 3*INNER)
    b_o = bias_ref[1:2, :DIM]                                 # (1, DIM)

    # --- single lane-dense QKV projection ---
    qkv = jnp.dot(xn, wqkv_ref[...],
                  preferred_element_type=jnp.float32) + b_qkv  # (BN, 3*INNER)

    q = qkv[:, 0 * INNER:1 * INNER]                           # (BN, INNER) lane slices
    k = qkv[:, 1 * INNER:2 * INNER]
    v = qkv[:, 2 * INNER:3 * INNER]

    def split_heads(t):  # (B*N, H*DH) -> (B*H, N, DH)
        return (t.reshape(B, N, HEADS, DIM_HEAD)
                 .transpose(0, 2, 1, 3)
                 .reshape(B * HEADS, N, DIM_HEAD))

    qz, kz, vz = split_heads(q), split_heads(k), split_heads(v)

    # --- scaled dot-product attention (scale pre-folded into Q weights) ---
    s = jnp.einsum("znd,zmd->znm", qz, kz,
                   preferred_element_type=jnp.float32)        # (B*H, N, N)
    m = jnp.max(s, axis=-1, keepdims=True)
    e = jnp.exp(s - m)
    denom = jnp.sum(e, axis=-1, keepdims=True)
    attn = e / denom                                          # exact softmax
    oz = jnp.einsum("znm,zmd->znd", attn, vz,
                    preferred_element_type=jnp.float32)       # (B*H, N, DH)

    # --- merge heads back onto lanes and do one output projection ---
    out = (oz.reshape(B, HEADS, N, DIM_HEAD)
             .transpose(0, 2, 1, 3)
             .reshape(BN, INNER))                             # (BN, INNER)
    y = jnp.dot(out, wo_ref[...],
                preferred_element_type=jnp.float32) + b_o     # (BN, DIM)

    o_ref[...] = y.astype(o_ref.dtype)


def prepare_params(gamma, beta, w_qkv, w_o, b_o):
    """One-time parameter packing (parameter-load time, NOT in the per-call path).

    Folds the softmax scale into the Q columns of W_qkv and the LayerNorm affine
    (gamma/beta) into W_qkv / a QKV bias; packs the small bias vectors into one
    (2, 3*INNER) array so the kernel takes only 4 operands.
    """
    col_scale = jnp.concatenate(
        [jnp.full((INNER,), SCALE, w_qkv.dtype),
         jnp.ones((2 * INNER,), w_qkv.dtype)])
    w_scaled = w_qkv * col_scale[None, :]           # (DIM, 3*INNER), scale in Q cols
    w_qkv_packed = gamma[:, None] * w_scaled        # fold LN gamma into the rows
    b_qkv = beta @ w_scaled                         # fold LN beta: (3*INNER,)

    bias_pack = jnp.zeros((2, 3 * INNER), w_qkv.dtype)
    bias_pack = bias_pack.at[0, :].set(b_qkv)
    bias_pack = bias_pack.at[1, :DIM].set(b_o)
    return w_qkv_packed, jnp.asarray(w_o), bias_pack


@jax.jit
def attention_forward(x, w_qkv_packed, w_o, bias_pack):
    x2 = x.reshape(BN, DIM)                          # one (16, 32) slab
    vmem = pltpu.MemorySpace.VMEM
    y = pl.pallas_call(
        attention_kernel,
        out_shape=jax.ShapeDtypeStruct((BN, DIM), x.dtype),
        in_specs=[pl.BlockSpec(memory_space=vmem)] * 4,   # whole arrays, VMEM-resident
        out_specs=pl.BlockSpec(memory_space=vmem),
        cost_estimate=pl.CostEstimate(
            flops=300_000, transcendentals=600, bytes_accessed=40_000),
    )(x2, w_qkv_packed, w_o, bias_pack)
    return y.reshape(B, N, DIM)


def reference_forward(x, gamma, beta, w_qkv, w_o, b_o):
    """Pure-JAX reference matching the PyTorch module (eval mode)."""
    mean = jnp.mean(x, axis=-1, keepdims=True)
    var = jnp.mean((x - mean) ** 2, axis=-1, keepdims=True)
    xn = (x - mean) / jnp.sqrt(var + LN_EPS) * gamma + beta
    qkv = xn @ w_qkv                                      # (B, N, 3*INNER)
    q, k, v = jnp.split(qkv, 3, axis=-1)

    def to_heads(t):  # b n (h d) -> b h n d
        return t.reshape(B, N, HEADS, DIM_HEAD).transpose(0, 2, 1, 3)

    q, k, v = map(to_heads, (q, k, v))
    dots = jnp.einsum("bhnd,bhmd->bhnm", q, k) * SCALE
    attn = jax.nn.softmax(dots, axis=-1)
    out = jnp.einsum("bhnm,bhmd->bhnd", attn, v)
    out = out.transpose(0, 2, 1, 3).reshape(B, N, INNER)
    return out @ w_o + b_o


if __name__ == "__main__":
    key = jax.random.PRNGKey(0)
    kx, kg, kb, kq, kw, kbo = jax.random.split(key, 6)

    x = jax.random.normal(kx, (B, N, DIM), dtype=jnp.float32)
    gamma = jnp.ones((DIM,), jnp.float32) + 0.01 * jax.random.normal(kg, (DIM,), jnp.float32)
    beta = 0.01 * jax.random.normal(kb, (DIM,), jnp.float32)
    w_qkv = jax.random.normal(kq, (DIM, 3 * INNER), jnp.float32) * (DIM ** -0.5)
    w_o = jax.random.normal(kw, (INNER, DIM), jnp.float32) * (INNER ** -0.5)
    b_o = 0.01 * jax.random.normal(kbo, (DIM,), jnp.float32)

    # One-time parameter packing (outside the per-call jitted path).
    w_qkv_packed, w_o_packed, bias_pack = prepare_params(gamma, beta, w_qkv, w_o, b_o)
    w_qkv_packed, w_o_packed, bias_pack = jax.block_until_ready(
        (w_qkv_packed, w_o_packed, bias_pack))

    y = attention_forward(x, w_qkv_packed, w_o_packed, bias_pack)
    y = jax.block_until_ready(y)

    y_ref = reference_forward(x, gamma, beta, w_qkv, w_o, b_o)
    np.testing.assert_allclose(np.asarray(y), np.asarray(y_ref), rtol=1e-4, atol=1e-4)

    print("KERNEL_OK")
</pallas_src>

<mosaic_0001>
module attributes {stable_mosaic.version = 11 : i64} {
  func.func @attention_kernel(%arg0: memref<16x32xf32, #tpu.memory_space<vmem>>, %arg1: memref<32x192xf32, #tpu.memory_space<vmem>>, %arg2: memref<64x32xf32, #tpu.memory_space<vmem>>, %arg3: memref<2x192xf32, #tpu.memory_space<vmem>>, %arg4: memref<16x32xf32, #tpu.memory_space<vmem>>) attributes {dimension_semantics = [], scalar_prefetch = 0 : i64, scratch_operands = 0 : i64, tpu.core_type = #tpu.core_type<tc>} {
    %c0 = arith.constant 0 : index
    %c0_0 = arith.constant 0 : index
    %0 = vector.load %arg0[%c0, %c0_0] : memref<16x32xf32, #tpu.memory_space<vmem>>, vector<16x32xf32>
    %cst = arith.constant dense<0.000000e+00> : vector<16xf32>
    %1 = vector.multi_reduction <add>, %0, %cst [1] : vector<16x32xf32> to vector<16xf32>
    %2 = vector.shape_cast %1 : vector<16xf32> to vector<16x1xf32>
    %cst_1 = arith.constant 3.200000e+01 : f32
    %3 = vector.broadcast %cst_1 : f32 to vector<16x1xf32>
    %4 = arith.divf %2, %3 : vector<16x1xf32>
    %5 = vector.broadcast %4 : vector<16x1xf32> to vector<16x32xf32>
    %6 = arith.subf %0, %5 : vector<16x32xf32>
    %7 = arith.mulf %6, %6 : vector<16x32xf32>
    %cst_2 = arith.constant dense<0.000000e+00> : vector<16xf32>
    %8 = vector.multi_reduction <add>, %7, %cst_2 [1] : vector<16x32xf32> to vector<16xf32>
    %9 = vector.shape_cast %8 : vector<16xf32> to vector<16x1xf32>
    %cst_3 = arith.constant 3.200000e+01 : f32
    %10 = vector.broadcast %cst_3 : f32 to vector<16x1xf32>
    %11 = arith.divf %9, %10 : vector<16x1xf32>
    %cst_4 = arith.constant 9.99999974E-6 : f32
    %12 = vector.broadcast %cst_4 : f32 to vector<16x1xf32>
    %13 = arith.addf %11, %12 : vector<16x1xf32>
    %14 = math.rsqrt %13 : vector<16x1xf32>
    %15 = vector.broadcast %14 : vector<16x1xf32> to vector<16x32xf32>
    %16 = arith.mulf %6, %15 : vector<16x32xf32>
    %c0_5 = arith.constant 0 : index
    %c0_6 = arith.constant 0 : index
    %17 = vector.load %arg3[%c0_5, %c0_6] : memref<2x192xf32, #tpu.memory_space<vmem>>, vector<1x192xf32>
    %c1 = arith.constant 1 : index
    %c0_7 = arith.constant 0 : index
    %18 = vector.load %arg3[%c1, %c0_7] : memref<2x192xf32, #tpu.memory_space<vmem>>, vector<1x32xf32>
    %c0_8 = arith.constant 0 : index
    %c0_9 = arith.constant 0 : index
    %19 = vector.load %arg1[%c0_8, %c0_9] : memref<32x192xf32, #tpu.memory_space<vmem>>, vector<32x192xf32>
    %cst_10 = arith.constant dense<0.000000e+00> : vector<16x192xf32>
    %20 = tpu.matmul %16, %19, %cst_10 {dimension_numbers = #tpu.dot_dimension_numbers<[1], [0], [0], [1], [0, 0, 1, 1], [], []>} : vector<16x32xf32>, vector<32x192xf32>, vector<16x192xf32> -> vector<16x192xf32>
    %21 = vector.broadcast %17 : vector<1x192xf32> to vector<16x192xf32>
    %22 = arith.addf %20, %21 : vector<16x192xf32>
    %23 = vector.extract_strided_slice %22 {offsets = [0, 0], sizes = [16, 64], strides = [1, 1]} : vector<16x192xf32> to vector<16x64xf32>
    %24 = vector.extract_strided_slice %22 {offsets = [0, 64], sizes = [16, 64], strides = [1, 1]} : vector<16x192xf32> to vector<16x64xf32>
    %25 = vector.extract_strided_slice %22 {offsets = [0, 128], sizes = [16, 64], strides = [1, 1]} : vector<16x192xf32> to vector<16x64xf32>
    %26 = vector.shape_cast %23 : vector<16x64xf32> to vector<2x8x4x16xf32>
    %27 = tpu.transpose %26, [0, 2, 1, 3] : vector<2x8x4x16xf32> -> vector<2x4x8x16xf32>
    %28 = vector.shape_cast %27 : vector<2x4x8x16xf32> to vector<8x8x16xf32>
    %29 = vector.shape_cast %24 : vector<16x64xf32> to vector<2x8x4x16xf32>
    %30 = tpu.transpose %29, [0, 2, 1, 3] : vector<2x8x4x16xf32> -> vector<2x4x8x16xf32>
    %31 = vector.shape_cast %30 : vector<2x4x8x16xf32> to vector<8x8x16xf32>
    %32 = vector.shape_cast %25 : vector<16x64xf32> to vector<2x8x4x16xf32>
    %33 = tpu.transpose %32, [0, 2, 1, 3] : vector<2x8x4x16xf32> -> vector<2x4x8x16xf32>
    %34 = vector.shape_cast %33 : vector<2x4x8x16xf32> to vector<8x8x16xf32>
    "tpu.trace_start"() <{level = 10 : i32, message = "znd,zmd->znm"}> : () -> ()
    %cst_11 = arith.constant dense<0.000000e+00> : vector<8x8x8xf32>
    %35 = tpu.matmul %28, %31, %cst_11 {dimension_numbers = #tpu.dot_dimension_numbers<[2], [2], [1], [1], [0, 0, 0, 1, 1, 1], [0], [0]>} : vector<8x8x16xf32>, vector<8x8x16xf32>, vector<8x8x8xf32> -> vector<8x8x8xf32>
    "tpu.trace_stop"() : () -> ()
    %cst_12 = arith.constant dense<0xFF800000> : vector<8x8xf32>
    %36 = vector.multi_reduction <maximumf>, %35, %cst_12 [2] : vector<8x8x8xf32> to vector<8x8xf32>
    %37 = vector.shape_cast %36 : vector<8x8xf32> to vector<8x8x1xf32>
    %38 = vector.broadcast %37 : vector<8x8x1xf32> to vector<8x8x8xf32>
    %39 = arith.subf %35, %38 : vector<8x8x8xf32>
    %40 = math.exp %39 : vector<8x8x8xf32>
    %cst_13 = arith.constant dense<0.000000e+00> : vector<8x8xf32>
    %41 = vector.multi_reduction <add>, %40, %cst_13 [2] : vector<8x8x8xf32> to vector<8x8xf32>
    %42 = vector.shape_cast %41 : vector<8x8xf32> to vector<8x8x1xf32>
    %43 = vector.broadcast %42 : vector<8x8x1xf32> to vector<8x8x8xf32>
    %44 = arith.divf %40, %43 : vector<8x8x8xf32>
    "tpu.trace_start"() <{level = 10 : i32, message = "znm,zmd->znd"}> : () -> ()
    %cst_14 = arith.constant dense<0.000000e+00> : vector<8x8x16xf32>
    %45 = tpu.matmul %44, %34, %cst_14 {dimension_numbers = #tpu.dot_dimension_numbers<[2], [1], [1], [2], [0, 0, 0, 1, 1, 2], [0], [0]>} : vector<8x8x8xf32>, vector<8x8x16xf32>, vector<8x8x16xf32> -> vector<8x8x16xf32>
    "tpu.trace_stop"() : () -> ()
    %46 = vector.shape_cast %45 : vector<8x8x16xf32> to vector<2x4x8x16xf32>
    %47 = tpu.transpose %46, [0, 2, 1, 3] : vector<2x4x8x16xf32> -> vector<2x8x4x16xf32>
    %48 = vector.shape_cast %47 : vector<2x8x4x16xf32> to vector<16x64xf32>
    %c0_15 = arith.constant 0 : index
    %c0_16 = arith.constant 0 : index
    %49 = vector.load %arg2[%c0_15, %c0_16] : memref<64x32xf32, #tpu.memory_space<vmem>>, vector<64x32xf32>
    %cst_17 = arith.constant dense<0.000000e+00> : vector<16x32xf32>
    %50 = tpu.matmul %48, %49, %cst_17 {dimension_numbers = #tpu.dot_dimension_numbers<[1], [0], [0], [1], [0, 0, 1, 1], [], []>} : vector<16x64xf32>, vector<64x32xf32>, vector<16x32xf32> -> vector<16x32xf32>
    %51 = vector.broadcast %18 : vector<1x32xf32> to vector<16x32xf32>
    %52 = arith.addf %50, %51 : vector<16x32xf32>
    %c0_18 = arith.constant 0 : index
    %c0_19 = arith.constant 0 : index
    %53 = vector.load %arg4[%c0_18, %c0_19] : memref<16x32xf32, #tpu.memory_space<vmem>>, vector<16x32xf32>
    tpu.vector_store %arg4[%c0_18, %c0_19], %52 {strides = array<i32>} : memref<16x32xf32, #tpu.memory_space<vmem>>, vector<16x32xf32>,
    return
  }
}

</mosaic_0001>

<bundles_post_ra>
// kernel: attention_forward.1
= control target key start
LH: loop header
LB: loop body
LE: loop exit
PB: predicated region body
PF: predicated region fallthrough
CT: control target
= control target key end

     0   :  { %vm20_vm0 = vcmask 261120   ;;  %s2483_s0 = inlined_call_operand.vmem [shape: f32[16,32], index: 0, kind: input, shape index: {}]   ;;  %s2484_s1 = inlined_call_operand.vmem [shape: f32[32,192], index: 1, kind: input, shape index: {}]   ;;  %s2485_s2 = inlined_call_operand.vmem [shape: f32[64,32], index: 2, kind: input, shape index: {}]   ;;  %s2486_s3 = inlined_call_operand.vmem [shape: f32[2,192], index: 3, kind: input, shape index: {}]   ;;  %s2487_s4 = inlined_call_operand.hbm [shape: f32[16,32], index: 4, kind: output, shape index: {}]  }
   0x1   :  { %v18_v0 = vld [vmem:[%s2483_s0] sm:$0xff] }
   0x2   :  { %v21_v1 = vsel %vm20_vm0, %v18_v0, 0.0 }
   0x3   :  { %9 = vsyncpa [#allocation3], 0  ;;  %22 = vadd.xlane.f32.xlu0 %v21_v1  ;;  %v19_v2 = vld [vmem:[%s2483_s0 + $0x8] sm:$0xff]  ;;  %v1883_v4 = vmov 32.0   ;;  %v80_v21 = vld [vmem:[%s2484_s1 + $0x30] sm:$0xff]  ;;  %s1884_s9 = smov 80  }
   0x4   :  { %v24_v3 = vsel %vm20_vm0, %v19_v2, 0.0  ;;  %1819 = vrcp.f32 %v1883_v4  ;;  %v81_v22 = vld [vmem:[%s2484_s1 + $0x38] sm:$0xff]  ;;  %105 = vmatpush.msra.mxu0 %v80_v21  ;;  %v78_v23 = vld [vmem:[%s2484_s1 + $0x20] sm:$0xff]  ;;  %v79_v24 = vld [vmem:[%s2484_s1 + $0x28] sm:$0xff]  ;;  %s1885_s10 = smov 112   ;;  %s1886_s11 = smov 96  }
   0x5   :  { %128 = vmatpush.msra.mxu1 %v81_v22  ;;  %v76_v25 = vld [vmem:[%s2484_s1 + $0x10] sm:$0xff]  ;;  %v77_v26 = vld [vmem:[%s2484_s1 + $0x18] sm:$0xff]  ;;  %v74_v27 = vld [vmem:[%s2484_s1] sm:$0xff]  ;;  %s1887_s12 = smov 64   ;;  %v1888_v59 = vmov 1983009808  }
   0x6   :  { %106 = vmatpush.msra.mxu0 %v78_v23  ;;  %v75_v28 = vld [vmem:[%s2484_s1 + $0x8] sm:$0xff]  ;;  %v1962_v51 = vld [vmem:[%s2486_s3] ss:$2 sm:$0x3]  ;;  %v165_v60 = vunpack.c.l.s4 %v1888_v59  ;;  %vm160_vm8 = vcmask 1047556   ;;  %vm864_vm9 = vcmask 130048  }
   0x7   :  { %129 = vmatpush.msra.mxu1 %v79_v24  ;;  %v83_v52 = vperm.slane %v1962_v51, 0  ;;  %vm1073_vm10 = vcmask 64512   ;;  %s1890_s13 = smov 48   ;;  %s1891_s14 = smov 32  }
   0x8   :  { %107 = vmatpush.msra.mxu0 %v76_v25  ;;  %s1892_s15 = smov 16   ;;  %s1893_s6 = smov [#allocation2]  }
   0x9   :  { %130 = vmatpush.msra.mxu1 %v77_v26  ;;  %s1746_s7 = sshll.u32 %s1893_s6, 4  ;;  %s1747_s7 = int_to_ptr.vmem [resolvable:$true] %s1746_s7 }
   0xa   :  { %v1820_v5 = vpop.eup %1819  ;;  %108 = vmatpush.msra.mxu0 %v74_v27 }
   0xb   :  { %25 = vadd.xlane.f32.xlu0 %v24_v3  ;;  %v28_v6 = vmul.f32 32.0, %v1820_v5  ;;  %vm32_vm1 = vweird.f32 %v1820_v5  ;;  %131 = vmatpush.msra.mxu1 %v75_v28  ;;  %v1889_v3 = vmov 1934713408  }
   0xc   :  { %v189_v4 = vunpack.c.l.s4 %v1889_v3 }
   0xd   :  { %v29_v7 = vsub.f32 1.0, %v28_v6 }
   0xf   :  { %v30_v8 = vmul.f32 %v1820_v5, %v29_v7 }
  0x11   :  { %v31_v9 = vadd.f32 %v1820_v5, %v30_v8 }
  0x13   :  { %v33_v10 = vsel %vm32_vm1, %v1820_v5, %v31_v9 }
  0x76   :  { %v23_v11 = vpop.xlane.xlu0 %22 }
  0x77   :  { %v34_v12 = vmul.f32 %v33_v10, %v23_v11 }
  0x79   :  { %v36_v13 = vsub.f32 %v18_v0, %v34_v12  ;;  %v1975_v0 = vunpack.c.0.s8 %v165_v60 }
  0x7b   :  { %v38_v14 = vmul.f32 %v36_v13, %v36_v13 }
  0x7d   :  { %v40_v15 = vsel %vm20_vm0, %v38_v14, 0.0 }
  0x7e   :  { %41 = vadd.xlane.f32.xlu1 %v40_v15  ;;  %v26_v16 = vpop.xlane.xlu0 %25 }
  0x7f   :  { %v35_v17 = vmul.f32 %v33_v10, %v26_v16 }
  0x81   :  { %v37_v18 = vsub.f32 %v19_v2, %v35_v17 }
  0x83   :  { %v39_v19 = vmul.f32 %v37_v18, %v37_v18 }
  0x85   :  { %v43_v20 = vsel %vm20_vm0, %v39_v19, 0.0 }
  0x86   :  { %44 = vadd.xlane.f32.xlu1 %v43_v20 }
  0xf1   :  { %v42_v29 = vpop.xlane.xlu1 %41 }
  0xf2   :  { %v46_v30 = vmul.f32 %v42_v29, %v33_v10 }
  0xf4   :  { %v48_v31 = vadd.f32 1e-05, %v46_v30 }
  0xf6   :  { %1821 = vrsqrt.f32 %v48_v31  ;;  %vm56_vm3 = vweird.f32 %v48_v31 }
  0xf9   :  { %v45_v32 = vpop.xlane.xlu1 %44 }
  0xfa   :  { %v47_v33 = vmul.f32 %v45_v32, %v33_v10 }
  0xfc   :  { %v1822_v34 = vpop.eup %1821  ;;  %v49_v35 = vadd.f32 1e-05, %v47_v33 }
  0xfd   :  { %v51_v36 = vmul.f32 %v1822_v34, %v48_v31  ;;  %vm57_vm2 = vweird.f32 %v1822_v34 }
  0xfe   :  { %1823 = vrsqrt.f32 %v49_v35  ;;  %vm58_vm4 = vmor %vm56_vm3, %vm57_vm2  ;;  %vm66_vm5 = vweird.f32 %v49_v35 }
  0xff   :  { %v52_v37 = vmul.f32 %v1822_v34, %v51_v36 }
 0x101   :  { %v53_v38 = vmul.f32 0.5, %v52_v37 }
 0x103   :  { %v54_v39 = vsub.f32 1.5, %v53_v38 }
 0x104   :  { %v1824_v40 = vpop.eup %1823 }
 0x105   :  { %v61_v41 = vmul.f32 %v1824_v40, %v49_v35  ;;  %v55_v42 = vmul.f32 %v1822_v34, %v54_v39  ;;  %vm67_vm6 = vweird.f32 %v1824_v40 }
 0x106   :  { %vm68_vm7 = vmor %vm66_vm5, %vm67_vm6 }
 0x107   :  { %v62_v43 = vmul.f32 %v1824_v40, %v61_v41  ;;  %v59_v44 = vsel %vm58_vm4, %v1822_v34, %v55_v42 }
 0x108   :  { %v70_v45 = vmul.f32 %v59_v44, %v36_v13  ;;  %v1982_v13 = vunpack.c.0.s8 %v189_v4 }
 0x109   :  { %v63_v46 = vmul.f32 0.5, %v62_v43 }
 0x10a   :  { %1760 = vmatmul.msk.f32.vlgmr.msra.gmra.mxu0 %vm20_vm0, %v70_v45  ;;  %1762 = vmatmul.msk.f32.vlgmr.msra.gmra.mxu1 %vm20_vm0, %v70_v45 }
 0x10b   :  { %v64_v47 = vsub.f32 1.5, %v63_v46 }
 0x10d   :  { %v65_v48 = vmul.f32 %v1824_v40, %v64_v47 }
 0x10f   :  { %v69_v49 = vsel %vm68_vm7, %v1824_v40, %v65_v48 }
 0x110   :  { %v71_v50 = vmul.f32 %v69_v49, %v37_v18 }
 0x112   :  { %1761 = vmatmul.msk.f32.gmra.mxu0 %vm20_vm0, %v71_v50  ;;  %1763 = vmatmul.msk.f32.gmra.mxu1 %vm20_vm0, %v71_v50 }
 0x187   :  { %v110_v53 = vpop.f32.mrf.mxu0 }
 0x188   :  { %v111_v54 = vadd.f32 %v110_v53, %v83_v52 }
 0x18a   :  { %153 = vrot.lane.b32.xlu0 %v111_v54, %s1884_s9  ;;  %141 = vrot.lane.b32.xlu2 %v111_v54, %s1885_s10  ;;  %v162_v63 = vrot.slane %v111_v54, 4 }
 0x18f   :  { %v113_v55 = vpop.f32.mrf.mxu0 }
 0x190   :  { %v114_v56 = vadd.f32 %v113_v55, %v83_v52 }
 0x192   :  { %147 = vrot.lane.b32.xlu2 %v111_v54, %s1886_s11  ;;  %143 = vrot.lane.b32.xlu1 %v114_v56, %s1885_s10  ;;  %v218_v9 = vrot.slane %v114_v56, 4 }
 0x19a   :  { %149 = vrot.lane.b32.xlu2 %v114_v56, %s1886_s11 }
 0x1a2   :  { %155 = vrot.lane.b32.xlu2 %v114_v56, %s1884_s9 }
 0x1aa   :  { %380 = vrot.lane.b32.xlu2 %v111_v54, %s1887_s12 }
 0x1e4   :  { %v142_v57 = vpop.permute.xlu2 %141 }
 0x1e5   :  { %384 = vrot.lane.b32.xlu0 %v142_v57, %s1887_s12  ;;  %v174_v6 = vrot.slane %v142_v57, 4 }
 0x1ec   :  { %v148_v58 = vpop.permute.xlu2 %147 }
 0x1ed   :  { %382 = vrot.lane.b32.xlu0 %v114_v56, %s1887_s12  ;;  %388 = vrot.lane.b32.xlu2 %v148_v58, %s1887_s12  ;;  %v159_v61 = vrot.slane %v148_v58, 4  ;;  %v163_v1 = vsel %vm160_vm8, %v148_v58, %v162_v63 }
 0x1ee   :  { %v171_v5 = vperm.slane %v163_v1, %v1975_v0 }
 0x1ef   :  { %v161_v2 = vsel %vm160_vm8, %v159_v61, %v111_v54 }
 0x1f0   :  { %v167_v7 = vperm.slane %v161_v2, %v1975_v0  ;;  %v198_v16 = vrot.slane %v171_v5, 4 }
 0x1f2   :  { %v186_v18 = vrot.slane %v167_v7, 4 }
 0x1f4   :  { %v150_v62 = vpop.permute.xlu2 %149 }
 0x1f5   :  { %v216_v8 = vrot.slane %v150_v62, 4  ;;  %v219_v12 = vsel %vm160_vm8, %v150_v62, %v218_v9 }
 0x1f6   :  { %v227_v21 = vperm.slane %v219_v12, %v1975_v0 }
 0x1f7   :  { %v217_v19 = vsel %vm160_vm8, %v216_v8, %v114_v56 }
 0x1f8   :  { %v223_v26 = vperm.slane %v217_v19, %v1975_v0  ;;  %v254_v33 = vrot.slane %v227_v21, 4 }
 0x1fa   :  { %v242_v41 = vrot.slane %v223_v26, 4 }
 0x1fc   :  { %v156_v10 = vpop.permute.xlu2 %155  ;;  %v154_v11 = vpop.permute.xlu0 %153 }
 0x1fd   :  { %v172_v14 = vrot.slane %v154_v11, 4  ;;  %v175_v15 = vsel %vm160_vm8, %v154_v11, %v174_v6  ;;  %394 = vrot.lane.b32.xlu0 %v156_v10, %s1887_s12  ;;  %392 = vrot.lane.b32.xlu1 %v154_v11, %s1887_s12  ;;  %v228_v34 = vrot.slane %v156_v10, 4 }
 0x1fe   :  { %v183_v17 = vperm.slane %v175_v15, %v1975_v0 }
 0x1ff   :  { %v173_v20 = vsel %vm160_vm8, %v172_v14, %v142_v57 }
 0x200   :  { %v179_v22 = vperm.slane %v173_v20, %v1975_v0  ;;  %v196_v23 = vrot.slane %v183_v17, 4  ;;  %v199_v24 = vsel %vm160_vm8, %v183_v17, %v198_v16 }
 0x201   :  { %v207_v25 = vperm.slane %v199_v24, %v1982_v13 }
 0x202   :  { %v184_v27 = vrot.slane %v179_v22, 4  ;;  %v187_v28 = vsel %vm160_vm8, %v179_v22, %v186_v18  ;;  %v197_v29 = vsel %vm160_vm8, %v196_v23, %v171_v5 }
 0x203   :  { %v195_v30 = vperm.slane %v187_v28, %v1982_v13  ;;  %v203_v31 = vperm.slane %v197_v29, %v1982_v13  ;;  %v214_v32 = vrot.slane %v207_v25, 4 }
 0x204   :  { %v185_v35 = vsel %vm160_vm8, %v184_v27, %v167_v7  ;;  %v144_v36 = vpop.permute.xlu1 %143 }
 0x205   :  { %v191_v37 = vperm.slane %v185_v35, %v1982_v13  ;;  %v210_v38 = vrot.slane %v195_v30, 4  ;;  %v212_v39 = vrot.slane %v203_v31, 4  ;;  %v215_v40 = vsel %vm160_vm8, 0.0, %v214_v32  ;;  %386 = vrot.lane.b32.xlu2 %v144_v36, %s1887_s12  ;;  %390 = vrot.lane.b32.xlu1 %v150_v62, %s1887_s12 }
 0x206   :  { %v283_v42 = vsel %vm160_vm8, %v214_v32, %v203_v31  ;;  %v288_v43 = vrot.slane %v215_v40, 4  ;;  %v229_v44 = vsel %vm160_vm8, %v228_v34, %v144_v36  ;;  %v230_v50 = vrot.slane %v144_v36, 4 }
 0x207   :  { %v208_v45 = vrot.slane %v191_v37, 4  ;;  %v211_v46 = vsel %vm160_vm8, 0.0, %v210_v38  ;;  %v213_v47 = vsel %vm160_vm8, 0.0, %v212_v39  ;;  %v287_v48 = vperm.slane %v283_v42, %v1975_v0 }
 0x208   :  { %v277_v49 = vrot.slane %v211_v46, 4  ;;  %v235_v52 = vperm.slane %v229_v44, %v1975_v0  ;;  %v272_v53 = vsel %vm160_vm8, %v210_v38, %v191_v37  ;;  %v289_v56 = vsel %vm160_vm8, %v288_v43, %v213_v47 }
 0x209   :  { %v209_v54 = vsel %vm160_vm8, 0.0, %v208_v45  ;;  %v276_v55 = vperm.slane %v272_v53, %v1975_v0  ;;  %v308_v57 = vrot.slane %v287_v48, 4  ;;  %v231_v58 = vsel %vm160_vm8, %v156_v10, %v230_v50 }
 0x20a   :  { %v240_v59 = vrot.slane %v235_v52, 4  ;;  %v243_v60 = vsel %vm160_vm8, %v235_v52, %v242_v41  ;;  %v278_v61 = vsel %vm160_vm8, %v277_v49, %v209_v54  ;;  %v239_v62 = vperm.slane %v231_v58, %v1975_v0 }
 0x20b   :  { %v251_v63 = vperm.slane %v243_v60, %v1982_v13  ;;  %v282_v1 = vperm.slane %v278_v61, %v1975_v0  ;;  %v293_v2 = vperm.slane %v289_v56, %v1975_v0  ;;  %v296_v4 = vrot.slane %v276_v55, 4 }
 0x20c   :  { %v241_v3 = vsel %vm160_vm8, %v240_v59, %v223_v26  ;;  %v252_v6 = vrot.slane %v239_v62, 4  ;;  %v255_v7 = vsel %vm160_vm8, %v239_v62, %v254_v33 }
 0x20d   :  { %v247_v5 = vperm.slane %v241_v3, %v1982_v13  ;;  %v266_v8 = vrot.slane %v251_v63, 4  ;;  %v263_v9 = vperm.slane %v255_v7, %v1982_v13  ;;  %v297_v10 = vsel %vm160_vm8, %v282_v1, %v296_v4 }
 0x20e   :  { %v309_v11 = vsel %vm160_vm8, %v293_v2, %v308_v57  ;;  %v294_v12 = vrot.slane %v282_v1, 4  ;;  %v253_v14 = vsel %vm160_vm8, %v252_v6, %v227_v21  ;;  %v305_v24 = vperm.slane %v297_v10, %v1982_v13  ;;  %v381_v6 = vpop.permute.xlu2 %380 }
 0x20f   :  { %v264_v15 = vrot.slane %v247_v5, 4  ;;  %v267_v16 = vsel %vm160_vm8, 0.0, %v266_v8  ;;  %v326_v17 = vsel %vm160_vm8, %v266_v8, %v247_v5  ;;  %v259_v18 = vperm.slane %v253_v14, %v1982_v13 }
 0x210   :  { %v270_v19 = vrot.slane %v263_v9, 4  ;;  %v330_v20 = vperm.slane %v326_v17, %v1975_v0  ;;  %v331_v22 = vrot.slane %v267_v16, 4  ;;  %v317_v25 = vperm.slane %v309_v11, %v1982_v13 }
 0x211   :  { %v265_v23 = vsel %vm160_vm8, 0.0, %v264_v15  ;;  %v295_v26 = vsel %vm160_vm8, %v294_v12, %v276_v55  ;;  %v268_v21 = vrot.slane %v259_v18, 4  ;;  %v324_v32 = vrot.slane %v305_v24, 4 }
 0x212   :  { %v271_v27 = vsel %vm160_vm8, 0.0, %v270_v19  ;;  %v337_v28 = vsel %vm160_vm8, %v270_v19, %v259_v18  ;;  %v301_v29 = vperm.slane %v295_v26, %v1982_v13  ;;  %v322_v31 = vrot.slane %v317_v25, 4 }
 0x213   :  { %v342_v30 = vrot.slane %v271_v27, 4  ;;  %v306_v33 = vrot.slane %v293_v2, 4  ;;  %v269_v34 = vsel %vm160_vm8, 0.0, %v268_v21  ;;  %v332_v36 = vsel %vm160_vm8, %v331_v22, %v265_v23 }
 0x214   :  { %v320_v35 = vrot.slane %v301_v29, 4  ;;  %v341_v37 = vperm.slane %v337_v28, %v1975_v0  ;;  %v2043_v38 = vsel %vm160_vm8, %v322_v31, %v305_v24  ;;  %v336_v40 = vperm.slane %v332_v36, %v1975_v0 }
 0x215   :  { %v307_v39 = vsel %vm160_vm8, %v306_v33, %v287_v48  ;;  %v343_v41 = vsel %vm160_vm8, %v342_v30, %v269_v34  ;;  %v350_v44 = vrot.slane %v330_v20, 4  ;;  %v2051_v47 = vsel %vm160_vm8, %v317_v25, %v324_v32 }
 0x216   :  { %v313_v42 = vperm.slane %v307_v39, %v1982_v13  ;;  %v347_v43 = vperm.slane %v343_v41, %v1975_v0  ;;  %v362_v45 = vrot.slane %v341_v37, 4  ;;  %v348_v46 = vrot.slane %v336_v40, 4 }
 0x217   :  { %v351_v48 = vsel %vm160_vm8, %v336_v40, %v350_v44  ;;  %v406_v11 = vrot.slane %v381_v6, 4 }
 0x218   :  { %v318_v49 = vrot.slane %v313_v42, 4  ;;  %v2054_v50 = vsel %vm160_vm8, %v313_v42, %v320_v35  ;;  %v363_v52 = vsel %vm160_vm8, %v347_v43, %v362_v45  ;;  %v359_v53 = vperm.slane %v351_v48, %v1982_v13 }
 0x219   :  { %v371_v54 = vperm.slane %v363_v52, %v1982_v13  ;;  %v349_v55 = vsel %vm160_vm8, %v348_v46, %v330_v20  ;;  %v360_v56 = vrot.slane %v347_v43, 4 }
 0x21a   :  { %v2062_v57 = vsel %vm160_vm8, %v318_v49, %v301_v29  ;;  %v355_v58 = vperm.slane %v349_v55, %v1982_v13  ;;  %v378_v61 = vrot.slane %v359_v53, 4 }
 0x21b   :  { %v376_v59 = vrot.slane %v371_v54, 4  ;;  %v361_v60 = vsel %vm160_vm8, %v360_v56, %v341_v37 }
 0x21c   :  { %v367_v62 = vperm.slane %v361_v60, %v1982_v13  ;;  %v374_v63 = vrot.slane %v355_v58, 4  ;;  %v2071_v2 = vsel %vm160_vm8, %v371_v54, %v378_v61 }
 0x21d   :  { %v2068_v1 = vsel %vm160_vm8, %v376_v59, %v359_v53 }
 0x21e   :  { %v372_v3 = vrot.slane %v367_v62, 4  ;;  %v2074_v4 = vsel %vm160_vm8, %v367_v62, %v374_v63 }
 0x220   :  { %v2077_v5 = vsel %vm160_vm8, %v372_v3, %v355_v58 }
 0x247   :  { %v389_v8 = vpop.permute.xlu2 %388 }
 0x248   :  { %v404_v9 = vrot.slane %v389_v8, 4  ;;  %v407_v12 = vsel %vm160_vm8, %v389_v8, %v406_v11 }
 0x249   :  { %v415_v16 = vperm.slane %v407_v12, %v1975_v0 }
 0x24a   :  { %v405_v14 = vsel %vm160_vm8, %v404_v9, %v381_v6 }
 0x24b   :  { %v411_v17 = vperm.slane %v405_v14, %v1975_v0  ;;  %v442_v21 = vrot.slane %v415_v16, 4 }
 0x24d   :  { %v430_v28 = vrot.slane %v411_v17, 4 }
 0x257   :  { %v385_v7 = vpop.permute.xlu0 %384 }
 0x258   :  { %v418_v18 = vrot.slane %v385_v7, 4 }
 0x25f   :  { %v383_v10 = vpop.permute.xlu0 %382  ;;  %v387_v15 = vpop.permute.xlu2 %386 }
 0x260   :  { %v474_v19 = vrot.slane %v387_v15, 4  ;;  %v462_v44 = vrot.slane %v383_v10, 4 }
 0x26f   :  { %v393_v20 = vpop.permute.xlu1 %392  ;;  %v395_v22 = vpop.permute.xlu0 %394 }
 0x270   :  { %v416_v23 = vrot.slane %v393_v20, 4  ;;  %v419_v24 = vsel %vm160_vm8, %v393_v20, %v418_v18  ;;  %v472_v25 = vrot.slane %v395_v22, 4  ;;  %v475_v26 = vsel %vm160_vm8, %v395_v22, %v474_v19 }
 0x271   :  { %v427_v27 = vperm.slane %v419_v24, %v1975_v0  ;;  %v483_v31 = vperm.slane %v475_v26, %v1975_v0 }
 0x272   :  { %v417_v29 = vsel %vm160_vm8, %v416_v23, %v385_v7  ;;  %v473_v30 = vsel %vm160_vm8, %v472_v25, %v387_v15 }
 0x273   :  { %v423_v32 = vperm.slane %v417_v29, %v1975_v0  ;;  %v440_v33 = vrot.slane %v427_v27, 4  ;;  %v443_v34 = vsel %vm160_vm8, %v427_v27, %v442_v21  ;;  %v479_v35 = vperm.slane %v473_v30, %v1975_v0 }
 0x274   :  { %v451_v36 = vperm.slane %v443_v34, %v1982_v13  ;;  %v496_v49 = vrot.slane %v483_v31, 4 }
 0x275   :  { %v428_v37 = vrot.slane %v423_v32, 4  ;;  %v431_v39 = vsel %vm160_vm8, %v423_v32, %v430_v28  ;;  %v441_v40 = vsel %vm160_vm8, %v440_v33, %v415_v16  ;;  %v484_v46 = vrot.slane %v479_v35, 4 }
 0x276   :  { %v439_v41 = vperm.slane %v431_v39, %v1982_v13  ;;  %v447_v42 = vperm.slane %v441_v40, %v1982_v13  ;;  %v458_v43 = vrot.slane %v451_v36, 4 }
 0x277   :  { %v429_v45 = vsel %vm160_vm8, %v428_v37, %v411_v17  ;;  %v391_v48 = vpop.permute.xlu1 %390 }
 0x278   :  { %v435_v52 = vperm.slane %v429_v45, %v1982_v13  ;;  %v454_v53 = vrot.slane %v439_v41, 4  ;;  %v456_v54 = vrot.slane %v447_v42, 4  ;;  %v459_v55 = vsel %vm160_vm8, 0.0, %v458_v43 }
 0x279   :  { %v527_v56 = vsel %vm160_vm8, %v458_v43, %v447_v42  ;;  %v532_v58 = vrot.slane %v459_v55, 4  ;;  %v460_v59 = vrot.slane %v391_v48, 4  ;;  %v463_v60 = vsel %vm160_vm8, %v391_v48, %v462_v44 }
 0x27a   :  { %v452_v61 = vrot.slane %v435_v52, 4  ;;  %v455_v62 = vsel %vm160_vm8, 0.0, %v454_v53  ;;  %v457_v63 = vsel %vm160_vm8, 0.0, %v456_v54  ;;  %v531_v3 = vperm.slane %v527_v56, %v1975_v0 }
 0x27b   :  { %v521_v6 = vrot.slane %v455_v62, 4  ;;  %v461_v7 = vsel %vm160_vm8, %v460_v59, %v383_v10  ;;  %v471_v8 = vperm.slane %v463_v60, %v1975_v0  ;;  %v516_v9 = vsel %vm160_vm8, %v454_v53, %v435_v52 }
 0x27c   :  { %v467_v11 = vperm.slane %v461_v7, %v1975_v0  ;;  %v453_v12 = vsel %vm160_vm8, 0.0, %v452_v61  ;;  %v520_v14 = vperm.slane %v516_v9, %v1975_v0  ;;  %v533_v15 = vsel %vm160_vm8, %v532_v58, %v457_v63 }
 0x27d   :  { %v497_v16 = vsel %vm160_vm8, %v496_v49, %v471_v8  ;;  %v498_v17 = vrot.slane %v471_v8, 4  ;;  %v522_v18 = vsel %vm160_vm8, %v521_v6, %v453_v12  ;;  %v537_v19 = vperm.slane %v533_v15, %v1975_v0 }
 0x27e   :  { %v485_v10 = vsel %vm160_vm8, %v484_v46, %v467_v11  ;;  %v486_v20 = vrot.slane %v467_v11, 4  ;;  %v503_v22 = vperm.slane %v497_v16, %v1982_v13  ;;  %v526_v23 = vperm.slane %v522_v18, %v1975_v0 }
 0x27f   :  { %v491_v24 = vperm.slane %v485_v10, %v1982_v13  ;;  %v499_v25 = vsel %vm160_vm8, %v483_v31, %v498_v17  ;;  %v540_v26 = vrot.slane %v520_v14, 4  ;;  %v552_v21 = vrot.slane %v531_v3, 4 }
 0x280   :  { %v487_v27 = vsel %vm160_vm8, %v479_v35, %v486_v20  ;;  %v507_v28 = vperm.slane %v499_v25, %v1982_v13  ;;  %v512_v29 = vrot.slane %v503_v22, 4  ;;  %v538_v30 = vrot.slane %v526_v23, 4 }
 0x281   :  { %v495_v32 = vperm.slane %v487_v27, %v1982_v13  ;;  %v541_v33 = vsel %vm160_vm8, %v526_v23, %v540_v26  ;;  %v553_v34 = vsel %vm160_vm8, %v537_v19, %v552_v21  ;;  %v508_v31 = vrot.slane %v491_v24, 4 }
 0x282   :  { %v514_v36 = vrot.slane %v507_v28, 4  ;;  %v549_v37 = vperm.slane %v541_v33, %v1982_v13  ;;  %v561_v39 = vperm.slane %v553_v34, %v1982_v13  ;;  %v539_v35 = vsel %vm160_vm8, %v538_v30, %v520_v14 }
 0x283   :  { %v510_v40 = vrot.slane %v495_v32, 4  ;;  %v550_v41 = vrot.slane %v537_v19, 4  ;;  %v513_v42 = vsel %vm160_vm8, 0.0, %v512_v29  ;;  %v545_v55 = vperm.slane %v539_v35, %v1982_v13 }
 0x284   :  { %v515_v43 = vsel %vm160_vm8, 0.0, %v514_v36  ;;  %v581_v44 = vsel %vm160_vm8, %v514_v36, %v503_v22  ;;  %v566_v45 = vrot.slane %v561_v39, 4  ;;  %v509_v58 = vsel %vm160_vm8, 0.0, %v508_v31 }
 0x285   :  { %v511_v46 = vsel %vm160_vm8, 0.0, %v510_v40  ;;  %v570_v49 = vsel %vm160_vm8, %v510_v40, %v491_v24  ;;  %v585_v48 = vperm.slane %v581_v44, %v1975_v0  ;;  %v586_v52 = vrot.slane %v515_v43, 4 }
 0x286   :  { %v575_v53 = vrot.slane %v511_v46, 4  ;;  %v567_v54 = vsel %vm160_vm8, %v566_v45, %v549_v37  ;;  %v551_v56 = vsel %vm160_vm8, %v550_v41, %v531_v3  ;;  %v564_v63 = vrot.slane %v545_v55, 4 }
 0x287   :  { %v587_v59 = vsel %vm160_vm8, %v586_v52, %v513_v42  ;;  %v606_v60 = vrot.slane %v585_v48, 4  ;;  %1768 = vmatpush.xpose.msk.msrb.mxu0 %vm864_vm9, %v567_v54  ;;  %v557_v61 = vperm.slane %v551_v56, %v1982_v13  ;;  %v574_v6 = vperm.slane %v570_v49, %v1975_v0 }
 0x288   :  { %v591_v62 = vperm.slane %v587_v59, %v1975_v0  ;;  %v576_v7 = vsel %vm160_vm8, %v575_v53, %v509_v58  ;;  %v568_v15 = vrot.slane %v549_v37, 4  ;;  %v84_v44 = vperm.slane %v1962_v51, 1 }
 0x289   :  { %v562_v8 = vrot.slane %v557_v61, 4  ;;  %v580_v9 = vperm.slane %v576_v7, %v1975_v0  ;;  %v565_v3 = vsel %vm160_vm8, %v557_v61, %v564_v63  ;;  %v594_v11 = vrot.slane %v574_v6, 4 }
 0x28a   :  { %1769 = vmatmul.msk.f32.vlgmr.msrb.gmra.mxu0 %vm864_vm9, %v2043_v38  ;;  %v607_v12 = vsel %vm160_vm8, %v591_v62, %v606_v60  ;;  %v604_v14 = vrot.slane %v591_v62, 4  ;;  %v569_v25 = vsel %vm160_vm8, %v561_v39, %v568_v15 }
 0x28b   :  { %v563_v16 = vsel %vm160_vm8, %v562_v8, %v545_v55  ;;  %v615_v17 = vperm.slane %v607_v12, %v1982_v13  ;;  %v592_v18 = vrot.slane %v580_v9, 4  ;;  %v595_v19 = vsel %vm160_vm8, %v580_v9, %v594_v11 }
 0x28c   :  { %1764 = vmatpush.xpose.msk.msra.mxu3 %vm864_vm9, %v563_v16  ;;  %v605_v10 = vsel %vm160_vm8, %v604_v14, %v585_v48  ;;  %v603_v38 = vperm.slane %v595_v19, %v1982_v13 }
 0x28d   :  { %v620_v20 = vrot.slane %v615_v17, 4  ;;  %v593_v22 = vsel %vm160_vm8, %v592_v18, %v574_v6  ;;  %v611_v23 = vperm.slane %v605_v10, %v1982_v13 }
 0x28e   :  { %v599_v24 = vperm.slane %v593_v22, %v1982_v13  ;;  %v622_v27 = vrot.slane %v603_v38, 4 }
 0x28f   :  { %1765 = vmatmul.msk.f32.vlgmr.msra.gmra.mxu3 %vm864_vm9, %v2062_v57  ;;  %v621_v26 = vsel %vm160_vm8, %v620_v20, %v603_v38  ;;  %v616_v21 = vrot.slane %v611_v23, 4 }
 0x290   :  { %1766 = vmatpush.xpose.msk.msrb.mxu3 %vm864_vm9, %v565_v3  ;;  %1776 = vmatpush.xpose.msk.msra.mxu0 %vm864_vm9, %v621_v26  ;;  %v618_v29 = vrot.slane %v599_v24, 4  ;;  %v623_v30 = vsel %vm160_vm8, %v615_v17, %v622_v27 }
 0x291   :  { %v617_v28 = vsel %vm160_vm8, %v616_v21, %v599_v24  ;;  %1778 = vmatpush.xpose.msk.msrb.mxu1 %vm864_vm9, %v623_v30 }
 0x292   :  { %1772 = vmatpush.xpose.msk.msra.mxu2 %vm864_vm9, %v617_v28  ;;  %v619_v57 = vsel %vm160_vm8, %v611_v23, %v618_v29 }
 0x293   :  { %1777 = vmatmul.msk.f32.vlgmr.msra.gmra.mxu0 %vm864_vm9, %v2068_v1  ;;  %v133_v1 = vpop.f32.mrf.mxu1 }
 0x294   :  { %1770 = vmatpush.xpose.msk.msra.mxu3 %vm864_vm9, %v569_v25  ;;  %1779 = vmatmul.msk.f32.vlgmr.msrb.gmra.mxu1 %vm864_vm9, %v2071_v2  ;;  %v2197_v46 = vadd.f32 %v133_v1, %v84_v44 }
 0x295   :  { %1773 = vmatmul.msk.f32.vlgmr.msra.gmra.mxu2 %vm864_vm9, %v2077_v5 }
 0x297   :  { %1767 = vmatmul.msk.f32.vlgmr.msrb.gmra.mxu3 %vm864_vm9, %v2054_v50 }
 0x298   :  { %1774 = vmatpush.xpose.msk.msrb.mxu3 %vm864_vm9, %v619_v57 }
 0x29b   :  { %v136_v5 = vpop.f32.mrf.mxu1 }
 0x29c   :  { %v2195_v45 = vadd.f32 %v136_v5, %v84_v44 }
 0x29e   :  { %v1808_v49 = vpack.i.bf16 %v2195_v45, %v2197_v46 }
 0x29f   :  { %1771 = vmatmul.msk.f32.vlgmr.msra.gmra.mxu3 %vm864_vm9, %v2051_v47 }
 0x2a7   :  { %1775 = vmatmul.msk.f32.vlgmr.msrb.gmra.mxu3 %vm864_vm9, %v2074_v4 }
 0x307   :  { %v940_v32 = vpop.f32.mrf.mxu0 }
 0x308   :  { %v1080_v33 = vsel %vm1073_vm10, %v940_v32, -inf }
 0x309   :  { %1081 = vmax.xlane.f32.xlu0 %v1080_v33 }
 0x310   :  { %v1044_v47 = vpop.f32.mrf.mxu0 }
 0x311   :  { %v2184_v2 = vpop.f32.mrf.mxu1  ;;  %v1092_v4 = vsel %vm1073_vm10, %v1044_v47, -inf }
 0x312   :  { %v888_v34 = vpop.f32.mrf.mxu3  ;;  %v1095_v36 = vsel %vm1073_vm10, %v2184_v2, -inf }
 0x313   :  { %v1074_v50 = vsel %vm1073_vm10, %v888_v34, -inf  ;;  %1096 = vmax.xlane.f32.xlu1 %v1095_v36 }
 0x314   :  { %1075 = vmax.xlane.f32.xlu2 %v1074_v50  ;;  %v702_v50 = vrot.slane %v2195_v45, 4 }
 0x318   :  { %v992_v31 = vpop.f32.mrf.mxu2 }
 0x319   :  { %v1086_v41 = vsel %vm1073_vm10, %v992_v31, -inf }
 0x31a   :  { %v914_v37 = vpop.f32.mrf.mxu3 }
 0x31b   :  { %v1077_v39 = vsel %vm1073_vm10, %v914_v37, -inf }
 0x31c   :  { %1093 = vmax.xlane.f32.xlu2 %v1092_v4  ;;  %1078 = vmax.xlane.f32.xlu1 %v1077_v39 }
 0x322   :  { %v966_v40 = vpop.f32.mrf.mxu3 }
 0x323   :  { %v1083_v35 = vsel %vm1073_vm10, %v966_v40, -inf }
 0x324   :  { %1084 = vmax.xlane.f32.xlu2 %v1083_v35  ;;  %1087 = vmax.xlane.f32.xlu1 %v1086_v41 }
 0x32a   :  { %v1018_v42 = vpop.f32.mrf.mxu3 }
 0x32b   :  { %v1089_v43 = vsel %vm1073_vm10, %v1018_v42, -inf }
 0x32c   :  { %1090 = vmax.xlane.f32.xlu0 %v1089_v43 }
 0x33c   :  { %1809 = vrot.lane.b32.xlu2 %v1808_v49, %s1886_s11  ;;  %s1895_s11 = smov 8  }
 0x33d   :  { %1814 = vrot.lane.b32.xlu1 %v1808_v49, %s1884_s9  ;;  %s1748_s9 = sshll.u32 %s2487_s4, 4  ;;  %s1749_s9 = int_to_ptr.hbm [resolvable:$true] %s1748_s9 }
 0x340   :  { %1804 = vrot.lane.b32.xlu0 %v1808_v49, %s1885_s10  ;;  %s1894_s10 = smov 128  }
 0x37c   :  { %v1082_v48 = vpop.xlane.xlu0 %1081 }
 0x37d   :  { %v1100_v52 = vsub.f32 %v940_v32, %v1082_v48 }
 0x37f   :  { %v1110_v53 = vmul.f32 1.442695, %v1100_v52 }
 0x381   :  { %1825 = vpow2.f32 %v1110_v53 }
 0x386   :  { %v1097_v55 = vpop.xlane.xlu1 %1096 }
 0x387   :  { %v2204_v54 = vpop.eup %1825  ;;  %v1076_v51 = vpop.xlane.xlu2 %1075  ;;  %v1105_v19 = vsub.f32 %v2184_v2, %v1097_v55  ;;  %v646_v2 = vrot.slane %v2197_v46, 4 }
 0x388   :  { %v1098_v56 = vsub.f32 %v888_v34, %v1076_v51  ;;  %v1128_v58 = vsel %vm1073_vm10, %v2204_v54, 0.0 }
 0x389   :  { %1129 = vadd.xlane.f32.xlu1 %v1128_v58  ;;  %v1120_v20 = vmul.f32 1.442695, %v1105_v19 }
 0x38a   :  { %v1106_v59 = vmul.f32 1.442695, %v1098_v56 }
 0x38c   :  { %1827 = vpow2.f32 %v1106_v59 }
 0x38f   :  { %v1094_v60 = vpop.xlane.xlu2 %1093  ;;  %v1079_v61 = vpop.xlane.xlu1 %1078 }
 0x390   :  { %v1104_v62 = vsub.f32 %v1044_v47, %v1094_v60  ;;  %v1099_v63 = vsub.f32 %v914_v37, %v1079_v61 }
 0x392   :  { %v2208_v6 = vpop.eup %1827  ;;  %v1118_v7 = vmul.f32 1.442695, %v1104_v62  ;;  %v1108_v8 = vmul.f32 1.442695, %v1099_v63 }
 0x393   :  { %v1122_v9 = vsel %vm1073_vm10, %v2208_v6, 0.0 }
 0x394   :  { %1829 = vpow2.f32 %v1118_v7  ;;  %1123 = vadd.xlane.f32.xlu0 %v1122_v9 }
 0x395   :  { %1831 = vpow2.f32 %v1108_v8 }
 0x397   :  { %v1085_v3 = vpop.xlane.xlu2 %1084  ;;  %v1088_v11 = vpop.xlane.xlu1 %1087 }
 0x398   :  { %v1101_v12 = vsub.f32 %v966_v40, %v1085_v3  ;;  %v1102_v14 = vsub.f32 %v992_v31, %v1088_v11 }
 0x39a   :  { %v2212_v15 = vpop.eup %1829  ;;  %v1112_v16 = vmul.f32 1.442695, %v1101_v12  ;;  %v1114_v17 = vmul.f32 1.442695, %v1102_v14 }
 0x39b   :  { %v2214_v18 = vpop.eup %1831  ;;  %v1140_v10 = vsel %vm1073_vm10, %v2212_v15, 0.0 }
 0x39c   :  { %1833 = vpow2.f32 %v1112_v16  ;;  %1141 = vadd.xlane.f32.xlu1 %v1140_v10  ;;  %v1125_v38 = vsel %vm1073_vm10, %v2214_v18, 0.0 }
 0x39d   :  { %1835 = vpow2.f32 %v1114_v17  ;;  %1126 = vadd.xlane.f32.xlu2 %v1125_v38 }
 0x39e   :  { %1837 = vpow2.f32 %v1120_v20 }
 0x39f   :  { %v1091_v22 = vpop.xlane.xlu0 %1090  ;;  %v1810_v27 = vpop.permute.xlu2 %1809 }
 0x3a0   :  { %v1103_v23 = vsub.f32 %v1018_v42, %v1091_v22  ;;  %v1811_v29 = vunpack.i.l.bf16 %v1810_v27  ;;  %v1812_v30 = vunpack.i.h.bf16 %v1810_v27 }
 0x3a2   :  { %v2221_v24 = vpop.eup %1833  ;;  %v1116_v26 = vmul.f32 1.442695, %v1103_v23  ;;  %v644_v1 = vrot.slane %v1811_v29, 4  ;;  %v700_v33 = vrot.slane %v1812_v30, 4  ;;  %v647_v4 = vsel %vm160_vm8, %v1811_v29, %v646_v2 }
 0x3a3   :  { %v2223_v25 = vpop.eup %1835  ;;  %v1131_v21 = vsel %vm1073_vm10, %v2221_v24, 0.0  ;;  %v703_v40 = vsel %vm160_vm8, %v1812_v30, %v702_v50  ;;  %v655_v49 = vperm.slane %v647_v4, %v1975_v0 }
 0x3a4   :  { %1132 = vadd.xlane.f32.xlu0 %v1131_v21  ;;  %v1134_v28 = vsel %vm1073_vm10, %v2223_v25, 0.0  ;;  %1839 = vpow2.f32 %v1116_v26  ;;  %v2229_v57 = vpop.eup %1837  ;;  %v645_v36 = vsel %vm160_vm8, %v644_v1, %v2197_v46  ;;  %v701_v37 = vsel %vm160_vm8, %v700_v33, %v2195_v45 }
 0x3a5   :  { %1135 = vadd.xlane.f32.xlu2 %v1134_v28  ;;  %v1143_v5 = vsel %vm1073_vm10, %v2229_v57, 0.0  ;;  %v651_v35 = vperm.slane %v645_v36, %v1975_v0  ;;  %v707_v44 = vperm.slane %v701_v37, %v1975_v0  ;;  %v711_v52 = vperm.slane %v703_v40, %v1975_v0 }
 0x3a6   :  { %v682_v61 = vrot.slane %v655_v49, 4 }
 0x3a7   :  { %v670_v56 = vrot.slane %v651_v35, 4  ;;  %v726_v60 = vrot.slane %v707_v44, 4  ;;  %v738_v11 = vrot.slane %v711_v52, 4 }
 0x3aa   :  { %v2231_v32 = vpop.eup %1839 }
 0x3ab   :  { %v1137_v34 = vsel %vm1073_vm10, %v2231_v32, 0.0 }
 0x3ac   :  { %1138 = vadd.xlane.f32.xlu0 %v1137_v34 }
 0x3ad   :  { %1144 = vadd.xlane.f32.xlu2 %v1143_v5 }
 0x3af   :  { %v1815_v47 = vpop.permute.xlu1 %1814 }
 0x3b0   :  { %v1817_v39 = vunpack.i.h.bf16 %v1815_v47  ;;  %v1816_v31 = vunpack.i.l.bf16 %v1815_v47 }
 0x3b2   :  { %v1805_v41 = vpop.permute.xlu0 %1804  ;;  %v712_v42 = vrot.slane %v1817_v39, 4  ;;  %v656_v43 = vrot.slane %v1816_v31, 4 }
 0x3b3   :  { %v1807_v46 = vunpack.i.h.bf16 %v1805_v41  ;;  %v1806_v48 = vunpack.i.l.bf16 %v1805_v41 }
 0x3b5   :  { %v714_v45 = vrot.slane %v1807_v46, 4  ;;  %v658_v53 = vrot.slane %v1806_v48, 4  ;;  %v657_v51 = vsel %vm160_vm8, %v656_v43, %v1806_v48  ;;  %v713_v55 = vsel %vm160_vm8, %v712_v42, %v1807_v46 }
 0x3b6   :  { %v663_v58 = vperm.slane %v657_v51, %v1975_v0  ;;  %v719_v59 = vperm.slane %v713_v55, %v1975_v0 }
 0x3b7   :  { %v659_v62 = vsel %vm160_vm8, %v1816_v31, %v658_v53  ;;  %v715_v63 = vsel %vm160_vm8, %v1817_v39, %v714_v45 }
 0x3b8   :  { %v667_v7 = vperm.slane %v659_v62, %v1975_v0  ;;  %v668_v8 = vrot.slane %v663_v58, 4  ;;  %v671_v9 = vsel %vm160_vm8, %v663_v58, %v670_v56  ;;  %v723_v3 = vperm.slane %v715_v63, %v1975_v0 }
 0x3b9   :  { %v679_v12 = vperm.slane %v671_v9, %v1982_v13  ;;  %v724_v14 = vrot.slane %v719_v59, 4  ;;  %v727_v16 = vsel %vm160_vm8, %v719_v59, %v726_v60 }
 0x3ba   :  { %v669_v17 = vsel %vm160_vm8, %v668_v8, %v651_v35  ;;  %v680_v19 = vrot.slane %v667_v7, 4  ;;  %v683_v10 = vsel %vm160_vm8, %v667_v7, %v682_v61  ;;  %v735_v38 = vperm.slane %v727_v16, %v1982_v13 }
 0x3bb   :  { %v675_v20 = vperm.slane %v669_v17, %v1982_v13  ;;  %v691_v22 = vperm.slane %v683_v10, %v1982_v13  ;;  %v694_v23 = vrot.slane %v679_v12, 4  ;;  %v725_v26 = vsel %vm160_vm8, %v724_v14, %v707_v44 }
 0x3bc   :  { %v681_v21 = vsel %vm160_vm8, %v680_v19, %v655_v49  ;;  %v731_v27 = vperm.slane %v725_v26, %v1982_v13  ;;  %v736_v28 = vrot.slane %v723_v3, 4  ;;  %v739_v29 = vsel %vm160_vm8, %v723_v3, %v738_v11 }
 0x3bd   :  { %v687_v30 = vperm.slane %v681_v21, %v1982_v13  ;;  %v695_v1 = vsel %vm160_vm8, 0.0, %v694_v23  ;;  %v698_v33 = vrot.slane %v691_v22, 4  ;;  %v747_v5 = vperm.slane %v739_v29, %v1982_v13 }
 0x3be   :  { %v737_v34 = vsel %vm160_vm8, %v736_v28, %v711_v52  ;;  %v750_v2 = vrot.slane %v735_v38, 4  ;;  %v761_v50 = vrot.slane %v695_v1, 4  ;;  %v692_v36 = vrot.slane %v675_v20, 4 }
 0x3bf   :  { %v696_v47 = vrot.slane %v687_v30, 4  ;;  %v699_v37 = vsel %vm160_vm8, 0.0, %v698_v33  ;;  %v743_v4 = vperm.slane %v737_v34, %v1982_v13  ;;  %v754_v39 = vrot.slane %v747_v5, 4 }
 0x3c0   :  { %v751_v31 = vsel %vm160_vm8, 0.0, %v750_v2  ;;  %v767_v40 = vsel %vm160_vm8, %v698_v33, %v687_v30  ;;  %v772_v35 = vrot.slane %v699_v37, 4  ;;  %v693_v41 = vsel %vm160_vm8, 0.0, %v692_v36 }
 0x3c1   :  { %v752_v42 = vrot.slane %v743_v4, 4  ;;  %v755_v43 = vsel %vm160_vm8, 0.0, %v754_v39  ;;  %v815_v44 = vrot.slane %v751_v31, 4  ;;  %v821_v49 = vsel %vm160_vm8, %v754_v39, %v743_v4 }
 0x3c2   :  { %v826_v46 = vrot.slane %v755_v43, 4  ;;  %v697_v48 = vsel %vm160_vm8, 0.0, %v696_v47  ;;  %v756_v52 = vsel %vm160_vm8, %v694_v23, %v675_v20  ;;  %v762_v45 = vsel %vm160_vm8, %v761_v50, %v693_v41 }
 0x3c3   :  { %v760_v53 = vperm.slane %v756_v52, %v1975_v0  ;;  %v766_v51 = vperm.slane %v762_v45, %v1975_v0  ;;  %v771_v55 = vperm.slane %v767_v40, %v1975_v0  ;;  %v773_v56 = vsel %vm160_vm8, %v772_v35, %v697_v48 }
 0x3c4   :  { %v777_v58 = vperm.slane %v773_v56, %v1975_v0  ;;  %v748_v59 = vrot.slane %v731_v27, 4  ;;  %v753_v60 = vsel %vm160_vm8, 0.0, %v752_v42  ;;  %v810_v61 = vsel %vm160_vm8, %v750_v2, %v731_v27 }
 0x3c5   :  { %v780_v62 = vrot.slane %v760_v53, 4  ;;  %v792_v63 = vrot.slane %v771_v55, 4  ;;  %v814_v7 = vperm.slane %v810_v61, %v1975_v0  ;;  %v825_v8 = vperm.slane %v821_v49, %v1975_v0 }
 0x3c6   :  { %v749_v9 = vsel %vm160_vm8, 0.0, %v748_v59  ;;  %v827_v3 = vsel %vm160_vm8, %v826_v46, %v753_v60  ;;  %v778_v11 = vrot.slane %v766_v51, 4  ;;  %v790_v12 = vrot.slane %v777_v58, 4 }
 0x3c7   :  { %v781_v14 = vsel %vm160_vm8, %v766_v51, %v780_v62  ;;  %v793_v16 = vsel %vm160_vm8, %v777_v58, %v792_v63  ;;  %v816_v17 = vsel %vm160_vm8, %v815_v44, %v749_v9  ;;  %v831_v19 = vperm.slane %v827_v3, %v1975_v0 }
 0x3c8   :  { %v789_v10 = vperm.slane %v781_v14, %v1982_v13  ;;  %v801_v38 = vperm.slane %v793_v16, %v1982_v13  ;;  %v820_v20 = vperm.slane %v816_v17, %v1975_v0  ;;  %v834_v22 = vrot.slane %v814_v7, 4 }
 0x3c9   :  { %v846_v23 = vrot.slane %v825_v8, 4  ;;  %v779_v26 = vsel %vm160_vm8, %v778_v11, %v760_v53  ;;  %v791_v21 = vsel %vm160_vm8, %v790_v12, %v771_v55  ;;  %v844_v27 = vrot.slane %v831_v19, 4 }
 0x3ca   :  { %v806_v28 = vrot.slane %v801_v38, 4  ;;  %v808_v29 = vrot.slane %v789_v10, 4  ;;  %v835_v30 = vsel %vm160_vm8, %v820_v20, %v834_v22  ;;  %v785_v1 = vperm.slane %v779_v26, %v1982_v13 }
 0x3cb   :  { %v843_v33 = vperm.slane %v835_v30, %v1982_v13  ;;  %v847_v5 = vsel %vm160_vm8, %v831_v19, %v846_v23  ;;  %v797_v34 = vperm.slane %v791_v21, %v1982_v13  ;;  %v832_v2 = vrot.slane %v820_v20, 4 }
 0x3cc   :  { %v807_v50 = vsel %vm160_vm8, %v806_v28, %v789_v10  ;;  %v809_v36 = vsel %vm160_vm8, %v801_v38, %v808_v29  ;;  %v855_v47 = vperm.slane %v847_v5, %v1982_v13  ;;  %v804_v37 = vrot.slane %v785_v1, 4 }
 0x3cd   :  { %1330 = vmatpush.msrb.mxu0 %v807_v50  ;;  %1353 = vmatpush.msra.mxu1 %v809_v36  ;;  %v802_v4 = vrot.slane %v797_v34, 4  ;;  %v862_v39 = vrot.slane %v843_v33, 4  ;;  %v833_v31 = vsel %vm160_vm8, %v832_v2, %v814_v7  ;;  %v845_v40 = vsel %vm160_vm8, %v844_v27, %v825_v8 }
 0x3ce   :  { %v860_v35 = vrot.slane %v855_v47, 4  ;;  %v805_v41 = vsel %vm160_vm8, %v797_v34, %v804_v37  ;;  %v839_v42 = vperm.slane %v833_v31, %v1982_v13  ;;  %v851_v43 = vperm.slane %v845_v40, %v1982_v13 }
 0x3cf   :  { %v803_v44 = vsel %vm160_vm8, %v802_v4, %v785_v1  ;;  %v863_v49 = vsel %vm160_vm8, %v855_v47, %v862_v39  ;;  %1307 = vmatpush.msra.mxu3 %v805_v41 }
 0x3d0   :  { %v861_v46 = vsel %vm160_vm8, %v860_v35, %v843_v33  ;;  %1284 = vmatpush.msrb.mxu2 %v803_v44  ;;  %1445 = vmatpush.msrb.mxu1 %v863_v49  ;;  %v856_v48 = vrot.slane %v851_v43, 4  ;;  %v858_v52 = vrot.slane %v839_v42, 4 }
 0x3d1   :  { %1422 = vmatpush.msra.mxu0 %v861_v46 }
 0x3d2   :  { %v857_v45 = vsel %vm160_vm8, %v856_v48, %v839_v42  ;;  %v859_v53 = vsel %vm160_vm8, %v851_v43, %v858_v52 }
 0x3d3   :  { %1376 = vmatpush.msra.mxu2 %v857_v45  ;;  %1399 = vmatpush.msrb.mxu3 %v859_v53 }
 0x3fc   :  { %v1130_v51 = vpop.xlane.xlu1 %1129 }
 0x3fd   :  { %1841 = vrcp.f32 %v1130_v51  ;;  %v1187_v59 = vand.u32 2147483648, %v1130_v51  ;;  %v1185_v62 = vand.u32 2147483647, %v1130_v51  ;;  %vm1181_vm12 = vweird.f32 %v1130_v51 }
 0x3ff   :  { %v1188_v7 = vor.u32 1.1754944e-38, %v1187_v59  ;;  %vm1186_vm14 = vcmp.eq.f32.partialorder %v1185_v62, 8.507059e+37 }
 0x403   :  { %v1842_v55 = vpop.eup %1841 }
 0x404   :  { %v1177_v56 = vmul.f32 %v1842_v55, %v1130_v51  ;;  %vm1182_vm11 = vweird.f32 %v1842_v55 }
 0x405   :  { %vm1183_vm13 = vmor %vm1181_vm12, %vm1182_vm11 }
 0x406   :  { %v1178_v58 = vsub.f32 1.0, %v1177_v56 }
 0x407   :  { %v1124_v60 = vpop.xlane.xlu0 %1123 }
 0x408   :  { %v1179_v61 = vmul.f32 %v1842_v55, %v1178_v58  ;;  %1843 = vrcp.f32 %v1124_v60  ;;  %v1157_v38 = vand.u32 2147483648, %v1124_v60  ;;  %vm1151_vm1 = vweird.f32 %v1124_v60 }
 0x409   :  { %v1155_v22 = vand.u32 2147483647, %v1124_v60 }
 0x40a   :  { %v1180_v63 = vadd.f32 %v1842_v55, %v1179_v61  ;;  %v1158_v30 = vor.u32 1.1754944e-38, %v1157_v38 }
 0x40b   :  { %vm1156_vm3 = vcmp.eq.f32.partialorder %v1155_v22, 8.507059e+37 }
 0x40c   :  { %v1184_v8 = vsel %vm1183_vm13, %v1842_v55, %v1180_v63 }
 0x40d   :  { %v1189_v9 = vsel %vm1186_vm14, %v1188_v7, %v1184_v8 }
 0x40e   :  { %v1844_v3 = vpop.eup %1843  ;;  %v1190_v11 = vmul.f32 %v2204_v54, %v1189_v9 }
 0x40f   :  { %v1147_v12 = vmul.f32 %v1844_v3, %v1124_v60  ;;  %v1142_v14 = vpop.xlane.xlu1 %1141  ;;  %vm1152_vm15 = vweird.f32 %v1844_v3 }
 0x410   :  { %1845 = vrcp.f32 %v1142_v14  ;;  %v1127_v16 = vpop.xlane.xlu2 %1126  ;;  %1782 = vmatmul.msk.f32.vlgmr.msrb.gmra.mxu0 %vm1073_vm10, %v1190_v11  ;;  %vm2323_vm2 = vmor %vm1151_vm1, %vm1152_vm15  ;;  %v1245_v33 = vand.u32 2147483647, %v1142_v14  ;;  %v1247_v5 = vand.u32 2147483648, %v1142_v14  ;;  %vm1241_vm6 = vweird.f32 %v1142_v14 }
 0x411   :  { %v1148_v17 = vsub.f32 1.0, %v1147_v12  ;;  %1847 = vrcp.f32 %v1127_v16  ;;  %v1172_v50 = vand.u32 2147483648, %v1127_v16  ;;  %v1170_v37 = vand.u32 2147483647, %v1127_v16 }
 0x412   :  { %vm1166_vm11 = vweird.f32 %v1127_v16  ;;  %v1248_v43 = vor.u32 1.1754944e-38, %v1247_v5  ;;  %vm1246_vm13 = vcmp.eq.f32.partialorder %v1245_v33, 8.507059e+37 }
 0x413   :  { %v1149_v19 = vmul.f32 %v1844_v3, %v1148_v17  ;;  %v1173_v44 = vor.u32 1.1754944e-38, %v1172_v50  ;;  %vm1171_vm14 = vcmp.eq.f32.partialorder %v1170_v37, 8.507059e+37 }
 0x415   :  { %v1150_v10 = vadd.f32 %v1844_v3, %v1149_v19 }
 0x416   :  { %v1846_v20 = vpop.eup %1845 }
 0x417   :  { %v1848_v23 = vpop.eup %1847  ;;  %v1237_v54 = vmul.f32 %v1846_v20, %v1142_v14  ;;  %v2327_v21 = vpop.xlane.xlu0 %1132  ;;  %v1154_v29 = vsel %vm2323_vm2, %v1844_v3, %v1150_v10  ;;  %vm1242_vm4 = vweird.f32 %v1846_v20 }
 0x418   :  { %v1162_v27 = vmul.f32 %v1848_v23, %v1127_v16  ;;  %1849 = vrcp.f32 %v2327_v21  ;;  %v2330_v28 = vpop.xlane.xlu2 %1135  ;;  %v1159_v36 = vsel %vm1156_vm3, %v1158_v30, %v1154_v29  ;;  %vm1167_vm5 = vweird.f32 %v1848_v23  ;;  %vm2336_vm7 = vmor %vm1241_vm6, %vm1242_vm4 }
 0x419   :  { %v1238_v1 = vsub.f32 1.0, %v1237_v54  ;;  %1851 = vrcp.f32 %v2330_v28  ;;  %v1160_v4 = vmul.f32 %v2208_v6, %v1159_v36  ;;  %vm1168_vm12 = vmor %vm1166_vm11, %vm1167_vm5  ;;  %v1200_v55 = vand.u32 2147483647, %v2327_v21 }
 0x41a   :  { %v1163_v34 = vsub.f32 1.0, %v1162_v27  ;;  %v1202_v56 = vand.u32 2147483648, %v2327_v21  ;;  %v1215_v60 = vand.u32 2147483647, %v2330_v28  ;;  %v1217_v61 = vand.u32 2147483648, %v2330_v28 }
 0x41b   :  { %v1239_v2 = vmul.f32 %v1846_v20, %v1238_v1  ;;  %1780 = vmatmul.msk.f32.vlgmr.msrb.gmra.mxu2 %vm1073_vm10, %v1160_v4  ;;  %vm1196_vm2 = vweird.f32 %v2327_v21  ;;  %vm1211_vm4 = vweird.f32 %v2330_v28  ;;  %vm1201_vm5 = vcmp.eq.f32.partialorder %v1200_v55, 8.507059e+37 }
 0x41c   :  { %v1164_v47 = vmul.f32 %v1848_v23, %v1163_v34  ;;  %v1203_v9 = vor.u32 1.1754944e-38, %v1202_v56  ;;  %v1218_v14 = vor.u32 1.1754944e-38, %v1217_v61 }
 0x41d   :  { %v1240_v39 = vadd.f32 %v1846_v20, %v1239_v2 }
 0x41e   :  { %v1850_v31 = vpop.eup %1849  ;;  %v1165_v35 = vadd.f32 %v1848_v23, %v1164_v47 }
 0x41f   :  { %v1852_v41 = vpop.eup %1851  ;;  %v1244_v42 = vsel %vm2336_vm7, %v1846_v20, %v1240_v39  ;;  %v1192_v6 = vmul.f32 %v1850_v31, %v2327_v21  ;;  %v1139_v51 = vpop.xlane.xlu0 %1138  ;;  %vm1197_vm15 = vweird.f32 %v1850_v31  ;;  %vm1216_vm7 = vcmp.eq.f32.partialorder %v1215_v60, 8.507059e+37 }
 0x420   :  { %v1169_v49 = vsel %vm1168_vm12, %v1848_v23, %v1165_v35  ;;  %v1207_v46 = vmul.f32 %v1852_v41, %v2330_v28  ;;  %v1145_v48 = vpop.xlane.xlu2 %1144  ;;  %v1249_v52 = vsel %vm1246_vm13, %v1248_v43, %v1244_v42  ;;  %vm1212_vm1 = vweird.f32 %v1852_v41  ;;  %vm1198_vm3 = vmor %vm1196_vm2, %vm1197_vm15 }
 0x421   :  { %v1174_v45 = vsel %vm1171_vm14, %v1173_v44, %v1169_v49  ;;  %v1193_v53 = vsub.f32 1.0, %v1192_v6  ;;  %1853 = vrcp.f32 %v1145_v48  ;;  %v1250_v63 = vmul.f32 %v2212_v15, %v1249_v52  ;;  %vm1213_vm6 = vmor %vm1211_vm4, %vm1212_vm1 }
 0x422   :  { %v1208_v58 = vsub.f32 1.0, %v1207_v46  ;;  %1855 = vrcp.f32 %v1139_v51  ;;  %v1175_v7 = vmul.f32 %v2214_v18, %v1174_v45  ;;  %v1262_v26 = vand.u32 2147483648, %v1145_v48 }
 0x423   :  { %v1194_v59 = vmul.f32 %v1850_v31, %v1193_v53  ;;  %1786 = vmatmul.msk.f32.vlgmr.msra.gmra.mxu0 %vm1073_vm10, %v1250_v63  ;;  %v1232_v54 = vand.u32 2147483648, %v1139_v51  ;;  %v1260_v27 = vand.u32 2147483647, %v1145_v48  ;;  %v1230_v29 = vand.u32 2147483647, %v1139_v51 }
 0x424   :  { %v1209_v62 = vmul.f32 %v1852_v41, %v1208_v58  ;;  %1781 = vmatmul.msk.f32.vlgmr.msra.gmra.mxu3 %vm1073_vm10, %v1175_v7  ;;  %vm1256_vm13 = vweird.f32 %v1145_v48  ;;  %vm1226_vm14 = vweird.f32 %v1139_v51 }
 0x425   :  { %v1195_v8 = vadd.f32 %v1850_v31, %v1194_v59  ;;  %vm1261_vm2 = vcmp.eq.f32.partialorder %v1260_v27, 8.507059e+37 }
 0x426   :  { %v1210_v3 = vadd.f32 %v1852_v41, %v1209_v62 }
 0x427   :  { %v1854_v11 = vpop.eup %1853  ;;  %v1199_v12 = vsel %vm1198_vm3, %v1850_v31, %v1195_v8  ;;  %vm1231_vm3 = vcmp.eq.f32.partialorder %v1230_v29, 8.507059e+37 }
 0x428   :  { %v1856_v15 = vpop.eup %1855  ;;  %v1204_v16 = vsel %vm1201_vm5, %v1203_v9, %v1199_v12  ;;  %v1214_v18 = vsel %vm1213_vm6, %v1852_v41, %v1210_v3  ;;  %v1252_v17 = vmul.f32 %v1854_v11, %v1145_v48  ;;  %vm1257_vm11 = vweird.f32 %v1854_v11 }
 0x429   :  { %v1219_v19 = vsel %vm1216_vm7, %v1218_v14, %v1214_v18  ;;  %v1222_v10 = vmul.f32 %v1856_v15, %v1139_v51  ;;  %v1205_v38 = vmul.f32 %v2221_v24, %v1204_v16  ;;  %vm1227_vm12 = vweird.f32 %v1856_v15  ;;  %vm1258_vm15 = vmor %vm1256_vm13, %vm1257_vm11 }
 0x42a   :  { %v1253_v20 = vsub.f32 1.0, %v1252_v17  ;;  %v1220_v22 = vmul.f32 %v2223_v25, %v1219_v19  ;;  %v1263_v24 = vor.u32 1.1754944e-38, %v1262_v26  ;;  %vm1228_vm1 = vmor %vm1226_vm14, %vm1227_vm12  ;;  %v1233_v25 = vor.u32 1.1754944e-38, %v1232_v54 }
 0x42b   :  { %v1223_v23 = vsub.f32 1.0, %v1222_v10  ;;  %1783 = vmatmul.msk.f32.vlgmr.msra.gmra.mxu1 %vm1073_vm10, %v1205_v38 }
 0x42c   :  { %v1254_v21 = vmul.f32 %v1854_v11, %v1253_v20  ;;  %1784 = vmatmul.msk.f32.vlgmr.msra.gmra.mxu2 %vm1073_vm10, %v1220_v22 }
 0x42d   :  { %v1224_v28 = vmul.f32 %v1856_v15, %v1223_v23 }
 0x42e   :  { %v1255_v30 = vadd.f32 %v1854_v11, %v1254_v21 }
 0x42f   :  { %v1225_v1 = vadd.f32 %v1856_v15, %v1224_v28 }
 0x430   :  { %v1259_v33 = vsel %vm1258_vm15, %v1854_v11, %v1255_v30 }
 0x431   :  { %v1229_v5 = vsel %vm1228_vm1, %v1856_v15, %v1225_v1  ;;  %v1264_v34 = vsel %vm1261_vm2, %v1263_v24, %v1259_v33 }
 0x432   :  { %v1234_v2 = vsel %vm1231_vm3, %v1233_v25, %v1229_v5  ;;  %v1265_v50 = vmul.f32 %v2229_v57, %v1264_v34 }
 0x433   :  { %v1235_v36 = vmul.f32 %v2231_v32, %v1234_v2 }
 0x434   :  { %1787 = vmatmul.msk.f32.vlgmr.msrb.gmra.mxu1 %vm1073_vm10, %v1265_v50 }
 0x435   :  { %1785 = vmatmul.msk.f32.vlgmr.msrb.gmra.mxu3 %vm1073_vm10, %v1235_v36  ;;  %vm1710_vm10 = vcmask 523264  }
 0x48d   :  { %v1332_v47 = vpop.f32.mrf.mxu0 }
 0x48e   :  { %v1450_v39 = vrot.slane %v1332_v47, 4 }
 0x49e   :  { %v1286_v37 = vpop.f32.mrf.mxu2 }
 0x49f   :  { %v1452_v4 = vrot.slane %v1286_v37, 4  ;;  %v1451_v31 = vsel %vm160_vm8, %v1450_v39, %v1286_v37 }
 0x4a0   :  { %v1457_v35 = vperm.slane %v1451_v31, %v1975_v0  ;;  %v1424_v44 = vpop.f32.mrf.mxu0 }
 0x4a1   :  { %v1453_v40 = vsel %vm160_vm8, %v1332_v47, %v1452_v4  ;;  %v1506_v53 = vrot.slane %v1424_v44, 4 }
 0x4a2   :  { %v1461_v42 = vperm.slane %v1453_v40, %v1975_v0  ;;  %v1476_v49 = vrot.slane %v1457_v35, 4 }
 0x4a4   :  { %v1488_v52 = vrot.slane %v1461_v42, 4 }
 0x4a7   :  { %v1309_v43 = vpop.f32.mrf.mxu3 }
 0x4a8   :  { %v1355_v41 = vpop.f32.mrf.mxu1  ;;  %v1464_v32 = vrot.slane %v1309_v43, 4 }
 0x4a9   :  { %v1462_v57 = vrot.slane %v1355_v41, 4 }
 0x4aa   :  { %v1465_v46 = vsel %vm160_vm8, %v1355_v41, %v1464_v32 }
 0x4ab   :  { %v1463_v6 = vsel %vm160_vm8, %v1462_v57, %v1309_v43  ;;  %v1473_v45 = vperm.slane %v1465_v46, %v1975_v0 }
 0x4ac   :  { %v1469_v48 = vperm.slane %v1463_v6, %v1975_v0 }
 0x4ad   :  { %v1486_v58 = vrot.slane %v1473_v45, 4  ;;  %v1489_v59 = vsel %vm160_vm8, %v1473_v45, %v1488_v52 }
 0x4ae   :  { %v1474_v51 = vrot.slane %v1469_v48, 4  ;;  %v1477_v55 = vsel %vm160_vm8, %v1469_v48, %v1476_v49  ;;  %v1497_v62 = vperm.slane %v1489_v59, %v1982_v13 }
 0x4af   :  { %v1485_v56 = vperm.slane %v1477_v55, %v1982_v13  ;;  %v1378_v60 = vpop.f32.mrf.mxu2  ;;  %v1487_v9 = vsel %vm160_vm8, %v1486_v58, %v1461_v42 }
 0x4b0   :  { %v1475_v61 = vsel %vm160_vm8, %v1474_v51, %v1457_v35  ;;  %v1507_v63 = vsel %vm160_vm8, %v1506_v53, %v1378_v60  ;;  %v1508_v7 = vrot.slane %v1378_v60, 4  ;;  %v1493_v11 = vperm.slane %v1487_v9, %v1982_v13 }
 0x4b1   :  { %v1481_v8 = vperm.slane %v1475_v61, %v1982_v13  ;;  %v1500_v3 = vrot.slane %v1485_v56, 4  ;;  %v1504_v12 = vrot.slane %v1497_v62, 4  ;;  %v1513_v14 = vperm.slane %v1507_v63, %v1975_v0  ;;  %v1447_v15 = vpop.f32.mrf.mxu1 }
 0x4b2   :  { %v1509_v19 = vsel %vm160_vm8, %v1424_v44, %v1508_v7  ;;  %v1502_v10 = vrot.slane %v1493_v11, 4  ;;  %v1518_v54 = vrot.slane %v1447_v15, 4 }
 0x4b3   :  { %v1498_v16 = vrot.slane %v1481_v8, 4  ;;  %v1501_v18 = vsel %vm160_vm8, 0.0, %v1500_v3  ;;  %v1562_v17 = vsel %vm160_vm8, %v1500_v3, %v1481_v8  ;;  %v1505_v38 = vsel %vm160_vm8, 0.0, %v1504_v12 }
 0x4b4   :  { %v1566_v20 = vperm.slane %v1562_v17, %v1975_v0  ;;  %v1567_v22 = vrot.slane %v1501_v18, 4  ;;  %v1578_v26 = vrot.slane %v1505_v38, 4  ;;  %v1503_v21 = vsel %vm160_vm8, 0.0, %v1502_v10 }
 0x4b5   :  { %v1499_v23 = vsel %vm160_vm8, 0.0, %v1498_v16  ;;  %v1573_v28 = vsel %vm160_vm8, %v1504_v12, %v1493_v11  ;;  %v1517_v30 = vperm.slane %v1509_v19, %v1975_v0  ;;  %v1532_v33 = vrot.slane %v1513_v14, 4 }
 0x4b6   :  { %v1568_v27 = vsel %vm160_vm8, %v1567_v22, %v1499_v23  ;;  %v1586_v29 = vrot.slane %v1566_v20, 4  ;;  %v1577_v24 = vperm.slane %v1573_v28, %v1975_v0  ;;  %v1579_v25 = vsel %vm160_vm8, %v1578_v26, %v1503_v21 }
 0x4b7   :  { %v1572_v1 = vperm.slane %v1568_v27, %v1975_v0  ;;  %v1583_v34 = vperm.slane %v1579_v25, %v1975_v0  ;;  %v1544_v40 = vrot.slane %v1517_v30, 4 }
 0x4b8   :  { %v1401_v5 = vpop.f32.mrf.mxu3  ;;  %v1598_v47 = vrot.slane %v1577_v24, 4 }
 0x4b9   :  { %v1519_v2 = vsel %vm160_vm8, %v1518_v54, %v1401_v5  ;;  %v1520_v50 = vrot.slane %v1401_v5, 4  ;;  %v1587_v36 = vsel %vm160_vm8, %v1572_v1, %v1586_v29  ;;  %v1584_v39 = vrot.slane %v1572_v1, 4 }
 0x4ba   :  { %v1525_v37 = vperm.slane %v1519_v2, %v1975_v0  ;;  %v1595_v4 = vperm.slane %v1587_v36, %v1982_v13  ;;  %v1596_v31 = vrot.slane %v1583_v34, 4  ;;  %v1599_v41 = vsel %vm160_vm8, %v1583_v34, %v1598_v47 }
 0x4bb   :  { %v1521_v35 = vsel %vm160_vm8, %v1447_v15, %v1520_v50  ;;  %v1607_v32 = vperm.slane %v1599_v41, %v1982_v13  ;;  %v1585_v49 = vsel %vm160_vm8, %v1584_v39, %v1566_v20  ;;  %v1707_v41 = vld [vmem:[%s2485_s2 + $0x30] sm:$0xff] }
 0x4bc   :  { %v1529_v42 = vperm.slane %v1521_v35, %v1975_v0  ;;  %v1530_v57 = vrot.slane %v1525_v37, 4  ;;  %v1533_v43 = vsel %vm160_vm8, %v1525_v37, %v1532_v33  ;;  %v1614_v6 = vrot.slane %v1595_v4, 4 }
 0x4bd   :  { %v1541_v44 = vperm.slane %v1533_v43, %v1982_v13  ;;  %v1597_v46 = vsel %vm160_vm8, %v1596_v31, %v1577_v24  ;;  %v1612_v53 = vrot.slane %v1607_v32, 4  ;;  %v1591_v61 = vperm.slane %v1585_v49, %v1982_v13  ;;  %v1704_v43 = vld [vmem:[%s2485_s2 + $0x18] sm:$0xff] }
 0x4be   :  { %v1531_v48 = vsel %vm160_vm8, %v1530_v57, %v1513_v14  ;;  %v1542_v52 = vrot.slane %v1529_v42, 4  ;;  %v1545_v45 = vsel %vm160_vm8, %v1529_v42, %v1544_v40  ;;  %v1615_v58 = vsel %vm160_vm8, %v1607_v32, %v1614_v6  ;;  %v1706_v42 = vld [vmem:[%s2485_s2 + $0x28] sm:$0xff]  ;;  %v1705_v57 = vld [vmem:[%s2485_s2 + $0x20] sm:$0xff]  ;;  %v1703_v32 = vld [vmem:[%s2485_s2 + $0x10] sm:$0xff] }
 0x4bf   :  { %v1537_v51 = vperm.slane %v1531_v48, %v1982_v13  ;;  %v1553_v55 = vperm.slane %v1545_v45, %v1982_v13  ;;  %v1556_v56 = vrot.slane %v1541_v44, 4  ;;  %1688 = vrot.lane.b32.xlu2 %v1615_v58, %s1890_s13  ;;  %v1613_v60 = vsel %vm160_vm8, %v1612_v53, %v1595_v4  ;;  %v1702_v44 = vld [vmem:[%s2485_s2 + $0x8] sm:$0xff]  ;;  %v1701_v6 = vld [vmem:[%s2485_s2] sm:$0xff] }
 0x4c0   :  { %v1543_v59 = vsel %vm160_vm8, %v1542_v52, %v1517_v30  ;;  %v1603_v62 = vperm.slane %v1597_v46, %v1982_v13  ;;  %1680 = vrot.lane.b32.xlu1 %v1613_v60, %s1891_s14  ;;  %v1610_v14 = vrot.slane %v1591_v61, 4 }
 0x4c1   :  { %v1549_v63 = vperm.slane %v1543_v59, %v1982_v13  ;;  %v1554_v7 = vrot.slane %v1537_v51, 4  ;;  %v1557_v8 = vsel %vm160_vm8, 0.0, %v1556_v56  ;;  %v1560_v9 = vrot.slane %v1553_v55, 4 }
 0x4c2   :  { %v1616_v3 = vsel %vm160_vm8, %v1556_v56, %v1537_v51  ;;  %v1621_v11 = vrot.slane %v1557_v8, 4  ;;  %v1608_v12 = vrot.slane %v1603_v62, 4  ;;  %v1611_v10 = vsel %vm160_vm8, %v1603_v62, %v1610_v14 }
 0x4c3   :  { %v1555_v15 = vsel %vm160_vm8, 0.0, %v1554_v7  ;;  %v1558_v16 = vrot.slane %v1549_v63, 4  ;;  %v1561_v18 = vsel %vm160_vm8, 0.0, %v1560_v9  ;;  %v1627_v17 = vsel %vm160_vm8, %v1560_v9, %v1549_v63  ;;  %1672 = vrot.lane.b32.xlu0 %v1611_v10, %s1892_s15 }
 0x4c4   :  { %v1632_v19 = vrot.slane %v1561_v18, 4  ;;  %v1620_v38 = vperm.slane %v1616_v3, %v1975_v0  ;;  %v1622_v20 = vsel %vm160_vm8, %v1621_v11, %v1555_v15  ;;  %v1631_v26 = vperm.slane %v1627_v17, %v1975_v0 }
 0x4c5   :  { %v1559_v22 = vsel %vm160_vm8, 0.0, %v1558_v16  ;;  %v1626_v23 = vperm.slane %v1622_v20, %v1975_v0  ;;  %v1609_v54 = vsel %vm160_vm8, %v1608_v12, %v1591_v61  ;;  %v1818_v61 = vld [vmem:[%s2486_s3 + $0x1] ss:$0 sm:$0xff] }
 0x4c6   :  { %v1633_v21 = vsel %vm160_vm8, %v1632_v19, %v1559_v22  ;;  %v1640_v27 = vrot.slane %v1620_v38, 4  ;;  %v1652_v29 = vrot.slane %v1631_v26, 4 }
 0x4c7   :  { %v1637_v28 = vperm.slane %v1633_v21, %v1975_v0  ;;  %v1638_v30 = vrot.slane %v1626_v23, 4 }
 0x4c8   :  { %v1641_v1 = vsel %vm160_vm8, %v1626_v23, %v1640_v27 }
 0x4c9   :  { %v1653_v24 = vsel %vm160_vm8, %v1637_v28, %v1652_v29  ;;  %v1639_v25 = vsel %vm160_vm8, %v1638_v30, %v1620_v38  ;;  %v1650_v33 = vrot.slane %v1637_v28, 4  ;;  %v1649_v50 = vperm.slane %v1641_v1, %v1982_v13 }
 0x4ca   :  { %v1661_v5 = vperm.slane %v1653_v24, %v1982_v13  ;;  %v1645_v34 = vperm.slane %v1639_v25, %v1982_v13 }
 0x4cb   :  { %v1651_v2 = vsel %vm160_vm8, %v1650_v33, %v1631_v26  ;;  %v1668_v40 = vrot.slane %v1649_v50, 4 }
 0x4cc   :  { %v1666_v36 = vrot.slane %v1661_v5, 4  ;;  %v1657_v0 = vperm.slane %v1651_v2, %v1982_v13  ;;  %v1664_v47 = vrot.slane %v1645_v34, 4  ;;  %v1708_v13 = vld [vmem:[%s2485_s2 + $0x38] sm:$0xff] }
 0x4cd   :  { %v1669_v35 = vsel %vm160_vm8, %v1661_v5, %v1668_v40  ;;  %1725 = vmatpush.msrb.mxu2 %v1708_v13 }
 0x4ce   :  { %v1667_v37 = vsel %vm160_vm8, %v1666_v36, %v1649_v50  ;;  %v1662_v4 = vrot.slane %v1657_v0, 4  ;;  %v1665_v39 = vsel %vm160_vm8, %v1657_v0, %v1664_v47 }
 0x4cf   :  { %1682 = vrot.lane.b32.xlu1 %v1667_v37, %s1891_s14  ;;  %1674 = vrot.lane.b32.xlu0 %v1665_v39, %s1892_s15 }
 0x4d0   :  { %v1663_v31 = vsel %vm160_vm8, %v1662_v4, %v1645_v34  ;;  %1726 = vmatpush.msrb.mxu2 %v1707_v41  ;;  %vm1698_vm8 = vcmask 392192  }
 0x4d2   :  { %1727 = vmatpush.msrb.mxu2 %v1706_v42 }
 0x4d4   :  { %1728 = vmatpush.msrb.mxu2 %v1705_v57 }
 0x4d6   :  { %1729 = vmatpush.msrb.mxu2 %v1704_v43 }
 0x4d7   :  { %1690 = vrot.lane.b32.xlu0 %v1669_v35, %s1890_s13 }
 0x4d8   :  { %1730 = vmatpush.msrb.mxu2 %v1703_v32 }
 0x4da   :  { %1731 = vmatpush.msrb.mxu2 %v1702_v44 }
 0x4dc   :  { %1732 = vmatpush.msrb.mxu2 %v1701_v6 }
 0x519   :  { %v1689_v52 = vpop.permute.xlu2 %1688 }
 0x532   :  { %v1681_v49 = vpop.permute.xlu1 %1680 }
 0x535   :  { %v1673_v46 = vpop.permute.xlu0 %1672 }
 0x536   :  { %v1694_v48 = vsel %vm864_vm9, %v1609_v54, %v1673_v46 }
 0x537   :  { %v1696_v45 = vsel %vm20_vm0, %v1694_v48, %v1681_v49 }
 0x538   :  { %v1699_v53 = vsel %vm1698_vm8, %v1696_v45, %v1689_v52 }
 0x539   :  { %1788 = vmatmul.msk.f32.vlgmr.msrb.gmra.mxu2 %vm1710_vm10, %v1699_v53 }
 0x541   :  { %v1675_v51 = vpop.permute.xlu0 %1674  ;;  %v1683_v55 = vpop.permute.xlu1 %1682 }
 0x542   :  { %v1695_v56 = vsel %vm864_vm9, %v1663_v31, %v1675_v51 }
 0x543   :  { %v1697_v59 = vsel %vm20_vm0, %v1695_v56, %v1683_v55 }
 0x549   :  { %v1691_v58 = vpop.permute.xlu0 %1690 }
 0x54a   :  { %v1700_v60 = vsel %vm1698_vm8, %v1697_v59, %v1691_v58 }
 0x54b   :  { %1789 = vmatmul.msk.f32.gmra.mxu2 %vm1710_vm10, %v1700_v60 }
 0x5bc   :  { %v1734_v62 = vpop.f32.mrf.mxu2 }
 0x5bd   :  { %v1735_v63 = vadd.f32 %v1818_v61, %v1734_v62 }
 0x5bf   :  { %1740 = vst.msk [vmem:[#allocation2] sm:$0xff] %vm20_vm0, %v1735_v63 }
 0x5ce   :  { %v1737_v7 = vpop.f32.mrf.mxu2 }
 0x5cf   :  { %v1738_v8 = vadd.f32 %v1818_v61, %v1737_v7 }
 0x5d1   :  { %1741 = vst.msk [vmem:[#allocation2 + $0x8] sm:$0xff] %vm20_vm0, %v1738_v8 }
 0x5d2   :  { %1754 = dma.vmem_to_hbm [thread:$0]  %s1747_s7, 256, %s1749_s9, [#allocation3], %s1894_s10, %s1894_s10, %s1895_s11  }
 0x5d3   :  { %1881 = dma.done.wait [#allocation3], 256  }
 0x5d4   :  { %1882 = vsyncadd [#allocation3], 4294967040 }
 0x5d5   :  { %1759 = vsyncpa [#allocation3], 1 }

</bundles_post_ra>
